<compile_context>
chip_gen: v5e
topology: v5e:2x2
jax: 0.10.0
libtpu: 0.0.40
codegen_flags: <defaults>
</compile_context>

<pallas_src>
import jax
import jax.numpy as jnp
from jax.experimental import pallas as pl
from jax.experimental.pallas import tpu as pltpu


LANE = 128           # lane width (last-dim tile)
SUBLANE_BF16 = 16    # bf16 sublane packing tile


def _round_up(n, m):
    return ((n + m - 1) // m) * m


# ----------------------------------------------------------------------------
# Kernel: one batch tile does fc1+ReLU, fc2+ReLU, out in a single invocation.
# Weights / activations feed the MXU as bf16; accumulation + epilogue are f32.
# ----------------------------------------------------------------------------
def mlp_kernel(x_ref, w1_ref, b1_ref, w2_ref, b2_ref, w3_ref, b3_ref, o_ref):
    # fc1 + relu
    h1 = jnp.dot(x_ref[...], w1_ref[...], preferred_element_type=jnp.float32)
    h1 = jnp.maximum(h1 + b1_ref[...], 0.0)
    # fc2 + relu
    h2 = jnp.dot(h1.astype(jnp.bfloat16), w2_ref[...],
                 preferred_element_type=jnp.float32)
    h2 = jnp.maximum(h2 + b2_ref[...], 0.0)
    # out (no activation); lane-dense (padded-to-128) unmasked store
    y = jnp.dot(h2.astype(jnp.bfloat16), w3_ref[...],
                preferred_element_type=jnp.float32)
    o_ref[...] = y + b3_ref[...]


# ----------------------------------------------------------------------------
# One-time parameter preparation (NOT in the per-call path).
# ----------------------------------------------------------------------------
def prepare_params(w1, b1, w2, b2, w3, b3):
    """Zero-pad feature dims to multiples of 128 and cast weights to bf16 once."""
    f_in, h1 = w1.shape
    h2 = w2.shape[1]
    f_out = w3.shape[1]
    h1p = _round_up(h1, LANE)     # 300 -> 384
    h2p = _round_up(h2, LANE)     # 300 -> 384
    fop = _round_up(f_out, LANE)  # 21  -> 128

    # Zero padding is exact: padded h1/h2 columns are ReLU(0)=0 and the matching
    # padded weight rows are 0, so they contribute nothing downstream.
    w1p = jnp.pad(w1, ((0, 0), (0, h1p - h1))).astype(jnp.bfloat16)
    b1p = jnp.pad(b1, ((0, 0), (0, h1p - h1)))
    w2p = jnp.pad(w2, ((0, h1p - h1), (0, h2p - h2))).astype(jnp.bfloat16)
    b2p = jnp.pad(b2, ((0, 0), (0, h2p - h2)))
    w3p = jnp.pad(w3, ((0, h2p - h2), (0, fop - f_out))).astype(jnp.bfloat16)
    b3p = jnp.pad(b3, ((0, 0), (0, fop - f_out)))

    return {
        "w1": w1p, "b1": b1p,
        "w2": w2p, "b2": b2p,
        "w3": w3p, "b3": b3p,
        "f_out": int(f_out),   # python int, used only for the final slice
    }


# ----------------------------------------------------------------------------
# Per-call forward. Only the activation is cast/padded here.
# ----------------------------------------------------------------------------
def mlp_forward(x, params):
    B, F_in = x.shape
    w1, b1 = params["w1"], params["b1"]
    w2, b2 = params["w2"], params["b2"]
    w3, b3 = params["w3"], params["b3"]
    F_out = params["f_out"]
    H1p, H2p, OUTp = w1.shape[1], w2.shape[1], w3.shape[1]

    # Batch tiling: 256-row tiles for big batches (full MXU passes on v6e/v7x),
    # otherwise round the whole batch up to the bf16 sublane tile (16).
    if B >= 256:
        TB = 256
    elif B >= 128:
        TB = 128
    else:
        TB = _round_up(B, SUBLANE_BF16)
    B_pad = _round_up(B, TB)
    nb = B_pad // TB

    x_bf = x.astype(jnp.bfloat16)
    if B_pad != B:
        # Padded rows flow through ReLU(bias) etc. but are sliced off below.
        x_bf = jnp.pad(x_bf, ((0, B_pad - B), (0, 0)))

    out = pl.pallas_call(
        mlp_kernel,
        out_shape=jax.ShapeDtypeStruct((B_pad, OUTp), jnp.float32),
        grid=(nb,),
        in_specs=[
            pl.BlockSpec((TB, F_in), lambda i: (i, 0)),    # x: tiled on batch
            pl.BlockSpec((F_in, H1p), lambda i: (0, 0)),   # weights stay resident
            pl.BlockSpec((1, H1p), lambda i: (0, 0)),
            pl.BlockSpec((H1p, H2p), lambda i: (0, 0)),
            pl.BlockSpec((1, H2p), lambda i: (0, 0)),
            pl.BlockSpec((H2p, OUTp), lambda i: (0, 0)),
            pl.BlockSpec((1, OUTp), lambda i: (0, 0)),
        ],
        out_specs=pl.BlockSpec((TB, OUTp), lambda i: (i, 0)),
        compiler_params=pltpu.CompilerParams(
            dimension_semantics=("parallel",)),
    )(x_bf, w1, b1, w2, b2, w3, b3)

    return out[:B, :F_out]


# ----------------------------------------------------------------------------
# Init + references
# ----------------------------------------------------------------------------
def init_linear(key, fan_in, fan_out):
    # PyTorch-style uniform(-1/sqrt(fan_in), 1/sqrt(fan_in)) init.
    kw, kb = jax.random.split(key)
    bound = 1.0 / jnp.sqrt(jnp.float32(fan_in))
    w = jax.random.uniform(kw, (fan_in, fan_out), jnp.float32, -bound, bound)
    b = jax.random.uniform(kb, (1, fan_out), jnp.float32, -bound, bound)
    return w, b


def reference_forward_bf16(x, w1, b1, w2, b2, w3, b3):
    # Mirrors the kernel's bf16-input / f32-accumulate math (plumbing check).
    xb = x.astype(jnp.bfloat16)
    h1 = jnp.maximum(
        jnp.dot(xb, w1.astype(jnp.bfloat16),
                preferred_element_type=jnp.float32) + b1, 0.0)
    h2 = jnp.maximum(
        jnp.dot(h1.astype(jnp.bfloat16), w2.astype(jnp.bfloat16),
                preferred_element_type=jnp.float32) + b2, 0.0)
    return jnp.dot(h2.astype(jnp.bfloat16), w3.astype(jnp.bfloat16),
                   preferred_element_type=jnp.float32) + b3


def reference_forward_f32(x, w1, b1, w2, b2, w3, b3):
    # Pure f32 reference == the original PyTorch Model forward.
    h1 = jnp.maximum(jnp.dot(x, w1) + b1, 0.0)
    h2 = jnp.maximum(jnp.dot(h1, w2) + b2, 0.0)
    return jnp.dot(h2, w3) + b3


if __name__ == "__main__":
    in_features, h1, h2, out_features = 1040, 300, 300, 21
    batch = 8

    key = jax.random.PRNGKey(0)
    kx, k1, k2, k3 = jax.random.split(key, 4)

    x = jax.random.normal(kx, (batch, in_features), jnp.float32)
    w1, b1 = init_linear(k1, in_features, h1)
    w2, b2 = init_linear(k2, h1, h2)
    w3, b3 = init_linear(k3, h2, out_features)

    # One-time prep (bf16 cast + lane padding) — off the per-call hot path.
    params = prepare_params(w1, b1, w2, b2, w3, b3)

    out = mlp_forward(x, params)
    out = jax.block_until_ready(out)
    assert out.shape == (batch, out_features)

    # Plumbing check against the bf16-mirror reference (tight tolerance).
    ref_bf = reference_forward_bf16(x, w1, b1, w2, b2, w3, b3)
    assert jnp.allclose(out, ref_bf, atol=1e-2, rtol=1e-2), (
        float(jnp.max(jnp.abs(out - ref_bf))))

    # Fidelity check against the pure-f32 PyTorch-equivalent reference
    # (looser tolerance: bf16 weight rounding over a 1040-deep contraction).
    ref_f32 = reference_forward_f32(x, w1, b1, w2, b2, w3, b3)
    assert jnp.allclose(out, ref_f32, atol=5e-2, rtol=5e-2), (
        float(jnp.max(jnp.abs(out - ref_f32))))

    print("KERNEL_OK")
</pallas_src>

<mosaic_0001>
module attributes {stable_mosaic.version = 11 : i64} {
  func.func @mlp_kernel(%arg0: i32, %arg1: memref<16x1040xbf16, #tpu.memory_space<vmem>>, %arg2: memref<1040x384xbf16, #tpu.memory_space<vmem>>, %arg3: memref<1x384xf32, #tpu.memory_space<vmem>>, %arg4: memref<384x384xbf16, #tpu.memory_space<vmem>>, %arg5: memref<1x384xf32, #tpu.memory_space<vmem>>, %arg6: memref<384x128xbf16, #tpu.memory_space<vmem>>, %arg7: memref<1x128xf32, #tpu.memory_space<vmem>>, %arg8: memref<16x128xf32, #tpu.memory_space<vmem>>) attributes {dimension_semantics = [#tpu.dimension_semantics<parallel>], iteration_bounds = array<i64: 1>, scalar_prefetch = 0 : i64, scratch_operands = 0 : i64, tpu.core_type = #tpu.core_type<tc>, window_params = [{transform_indices = @transform_0, window_bounds = array<i64: 16, 1040>}, {pipeline_mode = #tpu.pipeline_mode<synchronous>, transform_indices = @transform_1, window_bounds = array<i64: 1040, 384>}, {pipeline_mode = #tpu.pipeline_mode<synchronous>, transform_indices = @transform_2, window_bounds = array<i64: 1, 384>}, {pipeline_mode = #tpu.pipeline_mode<synchronous>, transform_indices = @transform_3, window_bounds = array<i64: 384, 384>}, {pipeline_mode = #tpu.pipeline_mode<synchronous>, transform_indices = @transform_4, window_bounds = array<i64: 1, 384>}, {pipeline_mode = #tpu.pipeline_mode<synchronous>, transform_indices = @transform_5, window_bounds = array<i64: 384, 128>}, {pipeline_mode = #tpu.pipeline_mode<synchronous>, transform_indices = @transform_6, window_bounds = array<i64: 1, 128>}, {transform_indices = @transform_7, window_bounds = array<i64: 16, 128>}]} {
    %c0 = arith.constant 0 : index
    %c0_0 = arith.constant 0 : index
    %0 = vector.load %arg1[%c0, %c0_0] : memref<16x1040xbf16, #tpu.memory_space<vmem>>, vector<16x1040xbf16>
    %c0_1 = arith.constant 0 : index
    %c0_2 = arith.constant 0 : index
    %1 = vector.load %arg2[%c0_1, %c0_2] : memref<1040x384xbf16, #tpu.memory_space<vmem>>, vector<1040x384xbf16>
    %cst = arith.constant dense<0.000000e+00> : vector<16x384xf32>
    %2 = tpu.matmul %0, %1, %cst {dimension_numbers = #tpu.dot_dimension_numbers<[1], [0], [0], [1], [0, 0, 1, 1], [], []>} : vector<16x1040xbf16>, vector<1040x384xbf16>, vector<16x384xf32> -> vector<16x384xf32>
    %c0_3 = arith.constant 0 : index
    %c0_4 = arith.constant 0 : index
    %3 = vector.load %arg3[%c0_3, %c0_4] : memref<1x384xf32, #tpu.memory_space<vmem>>, vector<1x384xf32>
    %4 = vector.broadcast %3 : vector<1x384xf32> to vector<16x384xf32>
    %5 = arith.addf %2, %4 : vector<16x384xf32>
    %cst_5 = arith.constant 0.000000e+00 : f32
    %6 = vector.broadcast %cst_5 : f32 to vector<16x384xf32>
    %7 = arith.maximumf %5, %6 : vector<16x384xf32>
    %8 = arith.truncf %7 : vector<16x384xf32> to vector<16x384xbf16>
    %c0_6 = arith.constant 0 : index
    %c0_7 = arith.constant 0 : index
    %9 = vector.load %arg4[%c0_6, %c0_7] : memref<384x384xbf16, #tpu.memory_space<vmem>>, vector<384x384xbf16>
    %cst_8 = arith.constant dense<0.000000e+00> : vector<16x384xf32>
    %10 = tpu.matmul %8, %9, %cst_8 {dimension_numbers = #tpu.dot_dimension_numbers<[1], [0], [0], [1], [0, 0, 1, 1], [], []>} : vector<16x384xbf16>, vector<384x384xbf16>, vector<16x384xf32> -> vector<16x384xf32>
    %c0_9 = arith.constant 0 : index
    %c0_10 = arith.constant 0 : index
    %11 = vector.load %arg5[%c0_9, %c0_10] : memref<1x384xf32, #tpu.memory_space<vmem>>, vector<1x384xf32>
    %12 = vector.broadcast %11 : vector<1x384xf32> to vector<16x384xf32>
    %13 = arith.addf %10, %12 : vector<16x384xf32>
    %cst_11 = arith.constant 0.000000e+00 : f32
    %14 = vector.broadcast %cst_11 : f32 to vector<16x384xf32>
    %15 = arith.maximumf %13, %14 : vector<16x384xf32>
    %16 = arith.truncf %15 : vector<16x384xf32> to vector<16x384xbf16>
    %c0_12 = arith.constant 0 : index
    %c0_13 = arith.constant 0 : index
    %17 = vector.load %arg6[%c0_12, %c0_13] : memref<384x128xbf16, #tpu.memory_space<vmem>>, vector<384x128xbf16>
    %cst_14 = arith.constant dense<0.000000e+00> : vector<16x128xf32>
    %18 = tpu.matmul %16, %17, %cst_14 {dimension_numbers = #tpu.dot_dimension_numbers<[1], [0], [0], [1], [0, 0, 1, 1], [], []>} : vector<16x384xbf16>, vector<384x128xbf16>, vector<16x128xf32> -> vector<16x128xf32>
    %c0_15 = arith.constant 0 : index
    %c0_16 = arith.constant 0 : index
    %19 = vector.load %arg7[%c0_15, %c0_16] : memref<1x128xf32, #tpu.memory_space<vmem>>, vector<1x128xf32>
    %20 = vector.broadcast %19 : vector<1x128xf32> to vector<16x128xf32>
    %21 = arith.addf %18, %20 : vector<16x128xf32>
    %c0_17 = arith.constant 0 : index
    %c0_18 = arith.constant 0 : index
    %22 = vector.load %arg8[%c0_17, %c0_18] : memref<16x128xf32, #tpu.memory_space<vmem>>, vector<16x128xf32>
    tpu.vector_store %arg8[%c0_17, %c0_18], %21 {strides = array<i32>} : memref<16x128xf32, #tpu.memory_space<vmem>>, vector<16x128xf32>,
    return
  }
  func.func @transform_0(%arg0: i32) -> (i32, i32) {
    %c0_i32 = arith.constant 0 : i32
    %c0_i32_0 = arith.constant 0 : i32
    return %arg0, %c0_i32 : i32, i32
  }
  func.func @transform_1(%arg0: i32) -> (i32, i32) {
    %c0_i32 = arith.constant 0 : i32
    %c0_i32_0 = arith.constant 0 : i32
    %c0_i32_1 = arith.constant 0 : i32
    return %c0_i32, %c0_i32_0 : i32, i32
  }
  func.func @transform_2(%arg0: i32) -> (i32, i32) {
    %c0_i32 = arith.constant 0 : i32
    %c0_i32_0 = arith.constant 0 : i32
    %c0_i32_1 = arith.constant 0 : i32
    return %c0_i32, %c0_i32_0 : i32, i32
  }
  func.func @transform_3(%arg0: i32) -> (i32, i32) {
    %c0_i32 = arith.constant 0 : i32
    %c0_i32_0 = arith.constant 0 : i32
    %c0_i32_1 = arith.constant 0 : i32
    return %c0_i32, %c0_i32_0 : i32, i32
  }
  func.func @transform_4(%arg0: i32) -> (i32, i32) {
    %c0_i32 = arith.constant 0 : i32
    %c0_i32_0 = arith.constant 0 : i32
    %c0_i32_1 = arith.constant 0 : i32
    return %c0_i32, %c0_i32_0 : i32, i32
  }
  func.func @transform_5(%arg0: i32) -> (i32, i32) {
    %c0_i32 = arith.constant 0 : i32
    %c0_i32_0 = arith.constant 0 : i32
    %c0_i32_1 = arith.constant 0 : i32
    return %c0_i32, %c0_i32_0 : i32, i32
  }
  func.func @transform_6(%arg0: i32) -> (i32, i32) {
    %c0_i32 = arith.constant 0 : i32
    %c0_i32_0 = arith.constant 0 : i32
    %c0_i32_1 = arith.constant 0 : i32
    return %c0_i32, %c0_i32_0 : i32, i32
  }
  func.func @transform_7(%arg0: i32) -> (i32, i32) {
    %c0_i32 = arith.constant 0 : i32
    %c0_i32_0 = arith.constant 0 : i32
    return %arg0, %c0_i32 : i32, i32
  }
}

</mosaic_0001>

<bundles_post_ra>
// kernel: tpu_custom_call.1
= control target key start
LH: loop header
LB: loop body
LE: loop exit
PB: predicated region body
PF: predicated region fallthrough
CT: control target
= control target key end

     0   :  { %12 = vsyncpa [#allocation3], 0  ;;  %s4548_s0 = inlined_call_operand.hbm [shape: bf16[16,1040], index: 0, kind: input, shape index: {}]   ;;  %s4549_s1 = inlined_call_operand.hbm [shape: bf16[1040,384], index: 1, kind: input, shape index: {}]   ;;  %s4550_s2 = inlined_call_operand.hbm [shape: f32[1,384], index: 2, kind: input, shape index: {}]   ;;  %s4551_s3 = inlined_call_operand.hbm [shape: bf16[384,384], index: 3, kind: input, shape index: {}]   ;;  %s4552_s4 = inlined_call_operand.vmem [shape: f32[1,384], index: 4, kind: input, shape index: {}]   ;;  %s4553_s5 = inlined_call_operand.hbm [shape: bf16[384,128], index: 5, kind: input, shape index: {}]   ;;  %s4554_s6 = inlined_call_operand.vmem [shape: f32[1,128], index: 6, kind: input, shape index: {}]   ;;  %s4555_s7 = inlined_call_operand.hbm [shape: f32[16,128], index: 7, kind: output, shape index: {}]  }
   0x1   :  { %13 = vsyncpa [#allocation6], 0 }
   0x2   :  { %14 = vsyncpa [#allocation9], 0  ;;  %s33_s26 = sshll.u32 %s4549_s1, 4  ;;  %s34_s26 = int_to_ptr.hbm [resolvable:$true] %s33_s26 }
   0x3   :  { %15 = vsyncpa [#allocation4], 0  ;;  %s4412_s27 = smov [#allocation5]   ;;  %s57_s8 = sshll.u32 %s4551_s3, 4  ;;  %s58_s8 = int_to_ptr.hbm [resolvable:$true] %s57_s8 }
   0x4   :  { %s35_s28 = sshll.u32 %s4412_s27, 4  ;;  %s4413_s9 = smov 192   ;;  %s36_s28 = int_to_ptr.vmem [resolvable:$true] %s35_s28 }
   0x5   :  { %s4414_s10 = smov 12   ;;  %s4415_s11 = smov [#allocation8]  }
   0x6   :  { %41 = dma.hbm_to_vmem [thread:$0]  %s34_s26, 24960, %s36_s28, [#allocation6], %s4413_s9, %s4413_s9, %s4414_s10  }
   0x7   :  { %s59_s12 = sshll.u32 %s4415_s11, 4  ;;  %s20_s15 = sshll.u32 %s4548_s0, 4  ;;  %s60_s12 = int_to_ptr.vmem [resolvable:$true] %s59_s12  ;;  %s21_s15 = int_to_ptr.hbm [resolvable:$true] %s20_s15 }
   0x8   :  { %65 = dma.hbm_to_vmem [thread:$0]  %s58_s8, 9216, %s60_s12, [#allocation9], %s4413_s9, %s4413_s9, %s4414_s10  }
   0x9   :  { %s4416_s1 = smov [#allocation2]   ;;  %s47_s3 = sshll.u32 %s4550_s2, 4  ;;  %s48_s3 = int_to_ptr.hbm [resolvable:$true] %s47_s3 }
   0xa   :  { %s22_s16 = sshll.u32 %s4416_s1, 4  ;;  %s4417_s19 = smov 576   ;;  %s23_s16 = int_to_ptr.vmem [resolvable:$true] %s22_s16 }
   0xb   :  { %s4418_s20 = smov 36   ;;  %s4419_s21 = smov [#allocation7]  }
   0xc   :  { %28 = dma.hbm_to_vmem [thread:$0]  %s21_s15, 1152, %s23_s16, [#allocation3], %s4417_s19, %s4417_s19, %s4418_s20  }
   0xd   :  { %s49_s22 = sshll.u32 %s4419_s21, 4  ;;  %s72_s0 = sshll.u32 %s4553_s5, 4  ;;  %s50_s22 = int_to_ptr.vmem [resolvable:$true] %s49_s22  ;;  %s73_s0 = int_to_ptr.hbm [resolvable:$true] %s72_s0 }
   0xe   :  { %52 = dma.hbm_to_vmem [thread:$0]  %s48_s3, 48, %s50_s22, [#allocation6]  }
   0xf   :  { %s4420_s25 = smov [#allocation10]   ;;  %s4421_s27 = smov 64  }
  0x10   :  { %s74_s26 = sshll.u32 %s4420_s25, 4  ;;  %s4422_s28 = smov 4   ;;  %s75_s26 = int_to_ptr.vmem [resolvable:$true] %s74_s26 }
  0x11   :  { %80 = dma.hbm_to_vmem [thread:$0]  %s73_s0, 3072, %s75_s26, [#allocation9], %s4421_s27, %s4421_s27, %s4422_s28  }
  0x12   :  { %4404 = dma.done.wait [#allocation3], 1152  }
  0x13   :  { %4405 = vsyncadd [#allocation3], 4294966144 }
  0x14   :  { %4406 = dma.done.wait [#allocation6], 25008  }
  0x15   :  { %4407 = vsyncadd [#allocation6], 4294942288 }
  0x16   :  { %4408 = dma.done.wait [#allocation9], 12288  }
  0x17   :  { %4409 = vsyncadd [#allocation9], 4294955008  ;;  %v2864_v0 = vld [vmem:[#allocation5 + $0xa8] sm:$0xf]  ;;  %v3976_v1 = vld [vmem:[#allocation5 + $0xb0] sm:$0xf0] }
  0x18   :  { %v2960_v2 = vld [vmem:[#allocation5 + $0x168] sm:$0xf]  ;;  %v2865_v3 = vor.u32 %v3976_v1, %v2864_v0  ;;  %v4000_v4 = vld [vmem:[#allocation5 + $0x170] sm:$0xf0]  ;;  %v2852_v11 = vld [vmem:[#allocation5 + $0x90] sm:$0xf] }
  0x19   :  { %v3056_v5 = vld [vmem:[#allocation5 + $0x228] sm:$0xf]  ;;  %v4024_v6 = vld [vmem:[#allocation5 + $0x230] sm:$0xf0]  ;;  %v2961_v7 = vor.u32 %v4000_v4, %v2960_v2  ;;  %v3973_v13 = vld [vmem:[#allocation5 + $0x98] sm:$0xf0] }
  0x1a   :  { %v3057_v8 = vor.u32 %v4024_v6, %v3056_v5  ;;  %v3152_v9 = vld [vmem:[#allocation5 + $0x2e8] sm:$0xf]  ;;  %v4048_v10 = vld [vmem:[#allocation5 + $0x2f0] sm:$0xf0]  ;;  %1471 = vmatpush.bf16.msra.mxu0 %v2865_v3  ;;  %v2948_v14 = vld [vmem:[#allocation5 + $0x150] sm:$0xf]  ;;  %v2853_v16 = vor.u32 %v3973_v13, %v2852_v11 }
  0x1b   :  { %v3153_v12 = vor.u32 %v4048_v10, %v3152_v9  ;;  %v3997_v15 = vld [vmem:[#allocation5 + $0x158] sm:$0xf0]  ;;  %1485 = vmatpush.bf16.msra.mxu1 %v2961_v7  ;;  %v3044_v18 = vld [vmem:[#allocation5 + $0x210] sm:$0xf]  ;;  %v2840_v23 = vld [vmem:[#allocation5 + $0x78] sm:$0xf] }
  0x1c   :  { %1499 = vmatpush.bf16.msra.mxu2 %v3057_v8  ;;  %v2949_v17 = vor.u32 %v3997_v15, %v2948_v14  ;;  %v4021_v19 = vld [vmem:[#allocation5 + $0x218] sm:$0xf0]  ;;  %v3140_v20 = vld [vmem:[#allocation5 + $0x2d0] sm:$0xf]  ;;  %v3970_v24 = vld [vmem:[#allocation5 + $0x80] sm:$0xf0] }
  0x1d   :  { %1513 = vmatpush.bf16.msra.mxu3 %v3153_v12  ;;  %v3045_v21 = vor.u32 %v4021_v19, %v3044_v18  ;;  %v4045_v22 = vld [vmem:[#allocation5 + $0x2d8] sm:$0xf0]  ;;  %v2936_v26 = vld [vmem:[#allocation5 + $0x138] sm:$0xf]  ;;  %v3994_v27 = vld [vmem:[#allocation5 + $0x140] sm:$0xf0]  ;;  %v2841_v29 = vor.u32 %v3970_v24, %v2840_v23 }
  0x1e   :  { %v3141_v25 = vor.u32 %v4045_v22, %v3140_v20  ;;  %v3032_v28 = vld [vmem:[#allocation5 + $0x1f8] sm:$0xf]  ;;  %1472 = vmatpush.bf16.msra.mxu0 %v2853_v16  ;;  %v4018_v30 = vld [vmem:[#allocation5 + $0x200] sm:$0xf0]  ;;  %v2937_v33 = vor.u32 %v3994_v27, %v2936_v26  ;;  %v2828_v35 = vld [vmem:[#allocation5 + $0x60] sm:$0xf] }
  0x1f   :  { %v3128_v31 = vld [vmem:[#allocation5 + $0x2b8] sm:$0xf]  ;;  %v4042_v32 = vld [vmem:[#allocation5 + $0x2c0] sm:$0xf0]  ;;  %1486 = vmatpush.bf16.msra.mxu1 %v2949_v17  ;;  %v3033_v34 = vor.u32 %v4018_v30, %v3032_v28  ;;  %v3967_v36 = vld [vmem:[#allocation5 + $0x68] sm:$0xf0] }
  0x20   :  { %1500 = vmatpush.bf16.msra.mxu2 %v3045_v21  ;;  %v2924_v37 = vld [vmem:[#allocation5 + $0x120] sm:$0xf]  ;;  %v3129_v38 = vor.u32 %v4042_v32, %v3128_v31  ;;  %v3991_v39 = vld [vmem:[#allocation5 + $0x128] sm:$0xf0]  ;;  %v2829_v44 = vor.u32 %v3967_v36, %v2828_v35  ;;  %v2816_v47 = vld [vmem:[#allocation5 + $0x48] sm:$0xf] }
  0x21   :  { %1514 = vmatpush.bf16.msra.mxu3 %v3141_v25  ;;  %v3020_v40 = vld [vmem:[#allocation5 + $0x1e0] sm:$0xf]  ;;  %v4015_v41 = vld [vmem:[#allocation5 + $0x1e8] sm:$0xf0]  ;;  %v2925_v45 = vor.u32 %v3991_v39, %v2924_v37  ;;  %v3964_v48 = vld [vmem:[#allocation5 + $0x50] sm:$0xf0] }
  0x22   :  { %v3116_v42 = vld [vmem:[#allocation5 + $0x2a0] sm:$0xf]  ;;  %v4039_v43 = vld [vmem:[#allocation5 + $0x2a8] sm:$0xf0]  ;;  %1473 = vmatpush.bf16.msra.mxu0 %v2841_v29  ;;  %v3021_v46 = vor.u32 %v4015_v41, %v3020_v40  ;;  %v2912_v49 = vld [vmem:[#allocation5 + $0x108] sm:$0xf]  ;;  %v2817_v56 = vor.u32 %v3964_v48, %v2816_v47 }
  0x23   :  { %1487 = vmatpush.bf16.msra.mxu1 %v2937_v33  ;;  %v3117_v50 = vor.u32 %v4039_v43, %v3116_v42  ;;  %v3988_v51 = vld [vmem:[#allocation5 + $0x110] sm:$0xf0]  ;;  %v3008_v52 = vld [vmem:[#allocation5 + $0x1c8] sm:$0xf]  ;;  %v2804_v59 = vld [vmem:[#allocation5 + $0x30] sm:$0xf] }
  0x24   :  { %1501 = vmatpush.bf16.msra.mxu2 %v3033_v34  ;;  %v4012_v53 = vld [vmem:[#allocation5 + $0x1d0] sm:$0xf0]  ;;  %v3104_v54 = vld [vmem:[#allocation5 + $0x288] sm:$0xf]  ;;  %v2913_v57 = vor.u32 %v3988_v51, %v2912_v49  ;;  %v3961_v60 = vld [vmem:[#allocation5 + $0x38] sm:$0xf0] }
  0x25   :  { %1515 = vmatpush.bf16.msra.mxu3 %v3129_v38  ;;  %v4036_v55 = vld [vmem:[#allocation5 + $0x290] sm:$0xf0]  ;;  %v3009_v58 = vor.u32 %v4012_v53, %v3008_v52  ;;  %v2900_v61 = vld [vmem:[#allocation5 + $0xf0] sm:$0xf]  ;;  %v3985_v63 = vld [vmem:[#allocation5 + $0xf8] sm:$0xf0]  ;;  %v2805_v4 = vor.u32 %v3961_v60, %v2804_v59 }
  0x26   :  { %1474 = vmatpush.bf16.msra.mxu0 %v2829_v44  ;;  %v3105_v62 = vor.u32 %v4036_v55, %v3104_v54  ;;  %v2996_v0 = vld [vmem:[#allocation5 + $0x1b0] sm:$0xf]  ;;  %v4009_v1 = vld [vmem:[#allocation5 + $0x1b8] sm:$0xf0]  ;;  %v2901_v5 = vor.u32 %v3985_v63, %v2900_v61  ;;  %v2792_v7 = vld [vmem:[#allocation5 + $0x18] sm:$0xf] }
  0x27   :  { %1488 = vmatpush.bf16.msra.mxu1 %v2925_v45  ;;  %v3092_v2 = vld [vmem:[#allocation5 + $0x270] sm:$0xf]  ;;  %v4033_v3 = vld [vmem:[#allocation5 + $0x278] sm:$0xf0]  ;;  %v2997_v6 = vor.u32 %v4009_v1, %v2996_v0  ;;  %v3958_v8 = vld [vmem:[#allocation5 + $0x20] sm:$0xf0] }
  0x28   :  { %1502 = vmatpush.bf16.msra.mxu2 %v3021_v46  ;;  %v2888_v9 = vld [vmem:[#allocation5 + $0xd8] sm:$0xf]  ;;  %v3093_v10 = vor.u32 %v4033_v3, %v3092_v2  ;;  %v3982_v11 = vld [vmem:[#allocation5 + $0xe0] sm:$0xf0]  ;;  %v2793_v16 = vor.u32 %v3958_v8, %v2792_v7  ;;  %v2780_v17 = vld [vmem:[#allocation5] sm:$0xf] }
  0x29   :  { %1516 = vmatpush.bf16.msra.mxu3 %v3117_v50  ;;  %v2984_v12 = vld [vmem:[#allocation5 + $0x198] sm:$0xf]  ;;  %v4006_v13 = vld [vmem:[#allocation5 + $0x1a0] sm:$0xf0]  ;;  %v3955_v18 = vld [vmem:[#allocation5 + $0x8] sm:$0xf0]  ;;  %v2889_v19 = vor.u32 %v3982_v11, %v2888_v9 }
  0x2a   :  { %1475 = vmatpush.bf16.msra.mxu0 %v2817_v56  ;;  %v3080_v14 = vld [vmem:[#allocation5 + $0x258] sm:$0xf]  ;;  %v4030_v15 = vld [vmem:[#allocation5 + $0x260] sm:$0xf0]  ;;  %v2985_v20 = vor.u32 %v4006_v13, %v2984_v12  ;;  %v2876_v21 = vld [vmem:[#allocation5 + $0xc0] sm:$0xf]  ;;  %v2781_v31 = vor.u32 %v3955_v18, %v2780_v17 }
  0x2b   :  { %1489 = vmatpush.bf16.msra.mxu1 %v2913_v57  ;;  %v3979_v22 = vld [vmem:[#allocation5 + $0xc8] sm:$0xf0]  ;;  %v2972_v23 = vld [vmem:[#allocation5 + $0x180] sm:$0xf]  ;;  %v3081_v24 = vor.u32 %v4030_v15, %v3080_v14  ;;  %v3248_v26 = vld [vmem:[#allocation5 + $0x3a8] sm:$0xf] }
  0x2c   :  { %1503 = vmatpush.bf16.msra.mxu2 %v3009_v58  ;;  %v4003_v25 = vld [vmem:[#allocation5 + $0x188] sm:$0xf0]  ;;  %v4072_v27 = vld [vmem:[#allocation5 + $0x3b0] sm:$0xf0]  ;;  %v3344_v28 = vld [vmem:[#allocation5 + $0x468] sm:$0xf]  ;;  %v2877_v35 = vor.u32 %v3979_v22, %v2876_v21 }
  0x2d   :  { %1517 = vmatpush.bf16.msra.mxu3 %v3105_v62  ;;  %v4096_v29 = vld [vmem:[#allocation5 + $0x470] sm:$0xf0]  ;;  %v3440_v30 = vld [vmem:[#allocation5 + $0x528] sm:$0xf]  ;;  %v3068_v33 = vld [vmem:[#allocation5 + $0x240] sm:$0xf]  ;;  %v2973_v36 = vor.u32 %v4003_v25, %v2972_v23  ;;  %v3249_v39 = vor.u32 %v4072_v27, %v3248_v26 }
  0x2e   :  { %1476 = vmatpush.bf16.msra.mxu0 %v2805_v4  ;;  %v4120_v32 = vld [vmem:[#allocation5 + $0x530] sm:$0xf0]  ;;  %v4027_v34 = vld [vmem:[#allocation5 + $0x248] sm:$0xf0]  ;;  %v3536_v37 = vld [vmem:[#allocation5 + $0x5e8] sm:$0xf]  ;;  %v3345_v40 = vor.u32 %v4096_v29, %v3344_v28 }
  0x2f   :  { %1490 = vmatpush.bf16.msra.mxu1 %v2901_v5  ;;  %v4144_v38 = vld [vmem:[#allocation5 + $0x5f0] sm:$0xf0]  ;;  %v3236_v41 = vld [vmem:[#allocation5 + $0x390] sm:$0xf]  ;;  %v4069_v42 = vld [vmem:[#allocation5 + $0x398] sm:$0xf0]  ;;  %v3441_v43 = vor.u32 %v4120_v32, %v3440_v30  ;;  %v3069_v44 = vor.u32 %v4027_v34, %v3068_v33 }
  0x30   :  { %1504 = vmatpush.bf16.msra.mxu2 %v2997_v6  ;;  %v3332_v45 = vld [vmem:[#allocation5 + $0x450] sm:$0xf]  ;;  %v4093_v46 = vld [vmem:[#allocation5 + $0x458] sm:$0xf0]  ;;  %v3537_v48 = vor.u32 %v4144_v38, %v3536_v37  ;;  %v3224_v52 = vld [vmem:[#allocation5 + $0x378] sm:$0xf]  ;;  %v3237_v56 = vor.u32 %v4069_v42, %v3236_v41 }
  0x31   :  { %1518 = vmatpush.bf16.msra.mxu3 %v3093_v10  ;;  %v3428_v47 = vld [vmem:[#allocation5 + $0x510] sm:$0xf]  ;;  %v4117_v49 = vld [vmem:[#allocation5 + $0x518] sm:$0xf0]  ;;  %v2744_v53 = vld [vmem:[#allocation2] sm:$0xf]  ;;  %v3333_v57 = vor.u32 %v4093_v46, %v3332_v45 }
  0x32   :  { %1477 = vmatpush.bf16.msra.mxu0 %v2793_v16  ;;  %v3524_v50 = vld [vmem:[#allocation5 + $0x5d0] sm:$0xf]  ;;  %v4141_v51 = vld [vmem:[#allocation5 + $0x5d8] sm:$0xf0]  ;;  %v2752_v55 = vld [vmem:[#allocation2 + $0x8] sm:$0xf]  ;;  %v3429_v62 = vor.u32 %v4117_v49, %v3428_v47 }
  0x33   :  { %1491 = vmatpush.bf16.msra.mxu1 %v2889_v19  ;;  %v3949_v54 = vld [vmem:[#allocation2 + $0x20] sm:$0xf0]  ;;  %v4066_v58 = vld [vmem:[#allocation5 + $0x380] sm:$0xf0]  ;;  %v3320_v59 = vld [vmem:[#allocation5 + $0x438] sm:$0xf]  ;;  %v3525_v3 = vor.u32 %v4141_v51, %v3524_v50 }
  0x34   :  { %1505 = vmatpush.bf16.msra.mxu2 %v2985_v20  ;;  %v4481_v60 = vor.u32 %v3949_v54, %v2744_v53  ;;  %v3950_v61 = vld [vmem:[#allocation2 + $0x28] sm:$0xf0]  ;;  %v3416_v0 = vld [vmem:[#allocation5 + $0x4f8] sm:$0xf]  ;;  %v3945_v5 = vld [vmem:[#allocation2 + $0x4] sm:$0xf]  ;;  %v3225_v11 = vor.u32 %v4066_v58, %v3224_v52 }
  0x35   :  { %1519 = vmatpush.bf16.msra.mxu3 %v3081_v24  ;;  %v4090_v63 = vld [vmem:[#allocation5 + $0x440] sm:$0xf0]  ;;  %v4483_v2 = vor.u32 %v3950_v61, %v2752_v55  ;;  %v3512_v4 = vld [vmem:[#allocation5 + $0x5b8] sm:$0xf]  ;;  %v2746_v6 = vld [vmem:[#allocation2 + $0x24] sm:$0xf0] }
  0x36   :  { %1478 = vmatpush.bf16.msra.mxu0 %v2781_v31  ;;  %v4114_v1 = vld [vmem:[#allocation5 + $0x500] sm:$0xf0]  ;;  %v4487_v8 = vor.u32 %v3945_v5, %v2746_v6  ;;  %v2754_v10 = vld [vmem:[#allocation2 + $0x2c] sm:$0xf0]  ;;  %v3321_v12 = vor.u32 %v4090_v63, %v3320_v59  ;;  %v3212_v13 = vld [vmem:[#allocation5 + $0x360] sm:$0xf] }
  0x37   :  { %1492 = vmatpush.bf16.msra.mxu1 %v2877_v35  ;;  %v4138_v7 = vld [vmem:[#allocation5 + $0x5c0] sm:$0xf0]  ;;  %v3417_v15 = vor.u32 %v4114_v1, %v3416_v0  ;;  %v4063_v16 = vld [vmem:[#allocation5 + $0x368] sm:$0xf0]  ;;  %v3308_v17 = vld [vmem:[#allocation5 + $0x420] sm:$0xf] }
  0x38   :  { %1506 = vmatpush.bf16.msra.mxu2 %v2973_v36  ;;  %v3946_v9 = vld [vmem:[#allocation2 + $0xc] sm:$0xf]  ;;  %v4087_v18 = vld [vmem:[#allocation5 + $0x428] sm:$0xf0]  ;;  %v3513_v19 = vor.u32 %v4138_v7, %v3512_v4  ;;  %v3404_v20 = vld [vmem:[#allocation5 + $0x4e0] sm:$0xf]  ;;  %v3213_v24 = vor.u32 %v4063_v16, %v3212_v13 }
  0x39   :  { %1520 = vmatpush.bf16.msra.mxu3 %v3069_v44  ;;  %1479 = vmatmul.bf16.vlgmr.msra.gmra.mxu0 %v4481_v60  ;;  %v4489_v14 = vor.u32 %v3946_v9, %v2754_v10  ;;  %v4111_v21 = vld [vmem:[#allocation5 + $0x4e8] sm:$0xf0]  ;;  %v3500_v22 = vld [vmem:[#allocation5 + $0x5a0] sm:$0xf]  ;;  %v3309_v25 = vor.u32 %v4087_v18, %v3308_v17  ;;  %v3200_v26 = vld [vmem:[#allocation5 + $0x348] sm:$0xf] }
  0x3a   :  { %1527 = vmatpush.bf16.msrb.mxu0 %v3249_v39  ;;  %1493 = vmatmul.bf16.vlgmr.msra.gmra.mxu1 %v4487_v8  ;;  %v4135_v23 = vld [vmem:[#allocation5 + $0x5a8] sm:$0xf0]  ;;  %v3405_v27 = vor.u32 %v4111_v21, %v3404_v20  ;;  %v4060_v28 = vld [vmem:[#allocation5 + $0x350] sm:$0xf0]  ;;  %v3296_v29 = vld [vmem:[#allocation5 + $0x408] sm:$0xf] }
  0x3b   :  { %1541 = vmatpush.bf16.msrb.mxu1 %v3345_v40  ;;  %1507 = vmatmul.bf16.vlgmr.msra.gmra.mxu2 %v4483_v2  ;;  %v4084_v30 = vld [vmem:[#allocation5 + $0x410] sm:$0xf0]  ;;  %v3501_v31 = vor.u32 %v4135_v23, %v3500_v22  ;;  %v3392_v32 = vld [vmem:[#allocation5 + $0x4c8] sm:$0xf]  ;;  %v3201_v36 = vor.u32 %v4060_v28, %v3200_v26  ;;  %v3188_v38 = vld [vmem:[#allocation5 + $0x330] sm:$0xf] }
  0x3c   :  { %1555 = vmatpush.bf16.msrb.mxu2 %v3441_v43  ;;  %1521 = vmatmul.bf16.vlgmr.msra.gmra.mxu3 %v4489_v14  ;;  %v4108_v33 = vld [vmem:[#allocation5 + $0x4d0] sm:$0xf0]  ;;  %v3488_v34 = vld [vmem:[#allocation5 + $0x588] sm:$0xf]  ;;  %v3297_v37 = vor.u32 %v4084_v30, %v3296_v29  ;;  %v4057_v40 = vld [vmem:[#allocation5 + $0x338] sm:$0xf0] }
  0x3d   :  { %1569 = vmatpush.bf16.msrb.mxu3 %v3537_v48  ;;  %v4132_v35 = vld [vmem:[#allocation5 + $0x590] sm:$0xf0]  ;;  %v3393_v39 = vor.u32 %v4108_v33, %v3392_v32  ;;  %v3284_v41 = vld [vmem:[#allocation5 + $0x3f0] sm:$0xf]  ;;  %v4081_v42 = vld [vmem:[#allocation5 + $0x3f8] sm:$0xf0]  ;;  %v3189_v48 = vor.u32 %v4057_v40, %v3188_v38 }
  0x3e   :  { %1528 = vmatpush.bf16.msrb.mxu0 %v3237_v56  ;;  %v3489_v43 = vor.u32 %v4132_v35, %v3488_v34  ;;  %v3380_v44 = vld [vmem:[#allocation5 + $0x4b0] sm:$0xf]  ;;  %v4105_v45 = vld [vmem:[#allocation5 + $0x4b8] sm:$0xf0]  ;;  %v3285_v49 = vor.u32 %v4081_v42, %v3284_v41  ;;  %v3176_v50 = vld [vmem:[#allocation5 + $0x318] sm:$0xf] }
  0x3f   :  { %1542 = vmatpush.bf16.msrb.mxu1 %v3333_v57  ;;  %v3476_v46 = vld [vmem:[#allocation5 + $0x570] sm:$0xf]  ;;  %v4129_v47 = vld [vmem:[#allocation5 + $0x578] sm:$0xf0]  ;;  %v4054_v51 = vld [vmem:[#allocation5 + $0x320] sm:$0xf0]  ;;  %v3381_v52 = vor.u32 %v4105_v45, %v3380_v44 }
  0x40   :  { %1556 = vmatpush.bf16.msrb.mxu2 %v3429_v62  ;;  %v3272_v53 = vld [vmem:[#allocation5 + $0x3d8] sm:$0xf]  ;;  %v4078_v54 = vld [vmem:[#allocation5 + $0x3e0] sm:$0xf0]  ;;  %v3477_v56 = vor.u32 %v4129_v47, %v3476_v46  ;;  %v3164_v61 = vld [vmem:[#allocation5 + $0x300] sm:$0xf]  ;;  %v3177_v1 = vor.u32 %v4054_v51, %v3176_v50 }
  0x41   :  { %1570 = vmatpush.bf16.msrb.mxu3 %v3525_v3  ;;  %v3368_v55 = vld [vmem:[#allocation5 + $0x498] sm:$0xf]  ;;  %v4102_v57 = vld [vmem:[#allocation5 + $0x4a0] sm:$0xf0]  ;;  %v4051_v62 = vld [vmem:[#allocation5 + $0x308] sm:$0xf0]  ;;  %v3273_v3 = vor.u32 %v4078_v54, %v3272_v53 }
  0x42   :  { %1529 = vmatpush.bf16.msrb.mxu0 %v3225_v11  ;;  %v3464_v58 = vld [vmem:[#allocation5 + $0x558] sm:$0xf]  ;;  %v4126_v59 = vld [vmem:[#allocation5 + $0x560] sm:$0xf0]  ;;  %v3260_v63 = vld [vmem:[#allocation5 + $0x3c0] sm:$0xf]  ;;  %v3369_v9 = vor.u32 %v4102_v57, %v3368_v55  ;;  %v3165_v21 = vor.u32 %v4051_v62, %v3164_v61 }
  0x43   :  { %1543 = vmatpush.bf16.msrb.mxu1 %v3321_v12  ;;  %v4075_v0 = vld [vmem:[#allocation5 + $0x3c8] sm:$0xf0]  ;;  %v3356_v4 = vld [vmem:[#allocation5 + $0x480] sm:$0xf]  ;;  %v2866_v7 = vld [vmem:[#allocation5 + $0xb4] sm:$0xf0]  ;;  %v3465_v13 = vor.u32 %v4126_v59, %v3464_v58 }
  0x44   :  { %1557 = vmatpush.bf16.msrb.mxu2 %v3417_v15  ;;  %v4099_v5 = vld [vmem:[#allocation5 + $0x488] sm:$0xf0]  ;;  %v2962_v11 = vld [vmem:[#allocation5 + $0x174] sm:$0xf0]  ;;  %v3452_v12 = vld [vmem:[#allocation5 + $0x540] sm:$0xf]  ;;  %v3261_v22 = vor.u32 %v4075_v0, %v3260_v63 }
  0x45   :  { %1571 = vmatpush.bf16.msrb.mxu3 %v3513_v19  ;;  %v3975_v6 = vld [vmem:[#allocation5 + $0xac] sm:$0xf]  ;;  %v2760_v16 = vld [vmem:[#allocation2 + $0x10] sm:$0xf]  ;;  %v2768_v18 = vld [vmem:[#allocation2 + $0x18] sm:$0xf]  ;;  %v3357_v26 = vor.u32 %v4099_v5, %v3356_v4 }
  0x46   :  { %1530 = vmatpush.bf16.msrb.mxu0 %v3213_v24  ;;  %v3999_v10 = vld [vmem:[#allocation5 + $0x16c] sm:$0xf]  ;;  %v3952_v19 = vld [vmem:[#allocation2 + $0x38] sm:$0xf0]  ;;  %v3058_v23 = vld [vmem:[#allocation5 + $0x234] sm:$0xf0] }
  0x47   :  { %1544 = vmatpush.bf16.msrb.mxu1 %v3309_v25  ;;  %v4123_v15 = vld [vmem:[#allocation5 + $0x548] sm:$0xf0]  ;;  %v2762_v25 = vld [vmem:[#allocation2 + $0x34] sm:$0xf0]  ;;  %v3948_v28 = vld [vmem:[#allocation2 + $0x1c] sm:$0xf]  ;;  %v4495_v41 = vor.u32 %v3952_v19, %v2768_v18 }
  0x48   :  { %1558 = vmatpush.bf16.msrb.mxu2 %v3405_v27  ;;  %v3951_v17 = vld [vmem:[#allocation2 + $0x30] sm:$0xf0]  ;;  %v2869_v27 = vor.u32 %v3975_v6, %v2866_v7  ;;  %v2770_v29 = vld [vmem:[#allocation2 + $0x3c] sm:$0xf0]  ;;  %v3972_v30 = vld [vmem:[#allocation5 + $0x94] sm:$0xf]  ;;  %v3453_v32 = vor.u32 %v4123_v15, %v3452_v12 }
  0x49   :  { %1572 = vmatpush.bf16.msrb.mxu3 %v3501_v31  ;;  %v4023_v20 = vld [vmem:[#allocation5 + $0x22c] sm:$0xf]  ;;  %v2965_v31 = vor.u32 %v3999_v10, %v2962_v11  ;;  %v2854_v33 = vld [vmem:[#allocation5 + $0x9c] sm:$0xf0]  ;;  %v3996_v34 = vld [vmem:[#allocation5 + $0x154] sm:$0xf]  ;;  %v4499_v46 = vor.u32 %v3948_v28, %v2770_v29 }
  0x4a   :  { %1531 = vmatpush.bf16.msrb.mxu0 %v3201_v36  ;;  %v3947_v24 = vld [vmem:[#allocation2 + $0x14] sm:$0xf]  ;;  %v2950_v35 = vld [vmem:[#allocation5 + $0x15c] sm:$0xf0]  ;;  %v4493_v36 = vor.u32 %v3951_v17, %v2760_v16  ;;  %v4020_v38 = vld [vmem:[#allocation5 + $0x214] sm:$0xf]  ;;  %v2857_v47 = vor.u32 %v3972_v30, %v2854_v33 }
  0x4b   :  { %1545 = vmatpush.bf16.msrb.mxu1 %v3297_v37  ;;  %v3061_v37 = vor.u32 %v4023_v20, %v3058_v23  ;;  %v4147_v40 = vld [vmem:[#allocation5 + $0x608] sm:$0xf0]  ;;  %v4497_v42 = vor.u32 %v3947_v24, %v2762_v25  ;;  %v3154_v45 = vld [vmem:[#allocation5 + $0x2f4] sm:$0xf0]  ;;  %v2842_v50 = vld [vmem:[#allocation5 + $0x84] sm:$0xf0] }
  0x4c   :  { %1559 = vmatpush.bf16.msrb.mxu2 %v3393_v39  ;;  %v3548_v39 = vld [vmem:[#allocation5 + $0x600] sm:$0xf]  ;;  %v4047_v44 = vld [vmem:[#allocation5 + $0x2ec] sm:$0xf]  ;;  %v3993_v53 = vld [vmem:[#allocation5 + $0x13c] sm:$0xf] }
  0x4d   :  { %1573 = vmatpush.bf16.msrb.mxu3 %v3489_v43  ;;  %v3046_v43 = vld [vmem:[#allocation5 + $0x21c] sm:$0xf0]  ;;  %v3549_v51 = vor.u32 %v4147_v40, %v3548_v39  ;;  %v2938_v54 = vld [vmem:[#allocation5 + $0x144] sm:$0xf0]  ;;  %v4017_v55 = vld [vmem:[#allocation5 + $0x1fc] sm:$0xf] }
  0x4e   :  { %1532 = vmatpush.bf16.msrb.mxu0 %v3189_v48  ;;  %v2953_v48 = vor.u32 %v3996_v34, %v2950_v35  ;;  %v3034_v57 = vld [vmem:[#allocation5 + $0x204] sm:$0xf0]  ;;  %v4044_v58 = vld [vmem:[#allocation5 + $0x2d4] sm:$0xf]  ;;  %v3142_v59 = vld [vmem:[#allocation5 + $0x2dc] sm:$0xf0]  ;;  %v2941_v62 = vor.u32 %v3993_v53, %v2938_v54 }
  0x4f   :  { %1546 = vmatpush.bf16.msrb.mxu1 %v3285_v49  ;;  %v3969_v49 = vld [vmem:[#allocation5 + $0x7c] sm:$0xf]  ;;  %v3966_v63 = vld [vmem:[#allocation5 + $0x64] sm:$0xf]  ;;  %v2830_v0 = vld [vmem:[#allocation5 + $0x6c] sm:$0xf0]  ;;  %v3145_v6 = vor.u32 %v4044_v58, %v3142_v59 }
  0x50   :  { %1560 = vmatpush.bf16.msrb.mxu2 %v3381_v52  ;;  %v3049_v52 = vor.u32 %v4020_v38, %v3046_v43  ;;  %v2845_v61 = vor.u32 %v3969_v49, %v2842_v50  ;;  %v2926_v4 = vld [vmem:[#allocation5 + $0x12c] sm:$0xf0]  ;;  %v4014_v5 = vld [vmem:[#allocation5 + $0x1e4] sm:$0xf]  ;;  %v3130_v10 = vld [vmem:[#allocation5 + $0x2c4] sm:$0xf0]  ;;  %v2833_v11 = vor.u32 %v3966_v63, %v2830_v0 }
  0x51   :  { %1574 = vmatpush.bf16.msrb.mxu3 %v3477_v56  ;;  %v3157_v56 = vor.u32 %v4047_v44, %v3154_v45  ;;  %v3022_v7 = vld [vmem:[#allocation5 + $0x1ec] sm:$0xf0]  ;;  %v2818_v15 = vld [vmem:[#allocation5 + $0x54] sm:$0xf0]  ;;  %v3987_v17 = vld [vmem:[#allocation5 + $0x10c] sm:$0xf] }
  0x52   :  { %1533 = vmatpush.bf16.msrb.mxu0 %v3177_v1  ;;  %v3037_v1 = vor.u32 %v4017_v55, %v3034_v57  ;;  %v3025_v16 = vor.u32 %v4014_v5, %v3022_v7  ;;  %v2914_v18 = vld [vmem:[#allocation5 + $0x114] sm:$0xf0]  ;;  %v4038_v25 = vld [vmem:[#allocation5 + $0x2a4] sm:$0xf]  ;;  %v3960_v28 = vld [vmem:[#allocation5 + $0x34] sm:$0xf] }
  0x53   :  { %1547 = vmatpush.bf16.msrb.mxu1 %v3273_v3  ;;  %v3990_v3 = vld [vmem:[#allocation5 + $0x124] sm:$0xf]  ;;  %v2776_v19 = vld [vmem:[#allocation2 + $0x20] sm:$0xf]  ;;  %v2806_v29 = vld [vmem:[#allocation5 + $0x3c] sm:$0xf0] }
  0x54   :  { %1561 = vmatpush.bf16.msrb.mxu2 %v3369_v9  ;;  %v4041_v9 = vld [vmem:[#allocation5 + $0x2bc] sm:$0xf]  ;;  %v2929_v12 = vor.u32 %v3990_v3, %v2926_v4  ;;  %v3010_v23 = vld [vmem:[#allocation5 + $0x1d4] sm:$0xf0]  ;;  %v2902_v33 = vld [vmem:[#allocation5 + $0xfc] sm:$0xf0]  ;;  %v2809_v38 = vor.u32 %v3960_v28, %v2806_v29 }
  0x55   :  { %1575 = vmatpush.bf16.msrb.mxu3 %v3465_v13  ;;  %v3963_v13 = vld [vmem:[#allocation5 + $0x4c] sm:$0xf]  ;;  %v3133_v20 = vor.u32 %v4041_v9, %v3130_v10  ;;  %vm1467_vm0 = vcmask 130048   ;;  %v4008_v34 = vld [vmem:[#allocation5 + $0x1b4] sm:$0xf]  ;;  %s4423_s30 = smov [#allocation11]  }
  0x56   :  { %1534 = vmatpush.bf16.msrb.mxu0 %v3165_v21  ;;  %v3953_v21 = vld [vmem:[#allocation2 + $0x40] sm:$0xf0]  ;;  %v2821_v24 = vor.u32 %v3963_v13, %v2818_v15  ;;  %v2998_v35 = vld [vmem:[#allocation5 + $0x1bc] sm:$0xf0]  ;;  %v4035_v39 = vld [vmem:[#allocation5 + $0x28c] sm:$0xf] }
  0x57   :  { %1548 = vmatpush.bf16.msrb.mxu1 %v3261_v22  ;;  %v4011_v22 = vld [vmem:[#allocation5 + $0x1cc] sm:$0xf]  ;;  %v4505_v30 = vor.u32 %v3953_v21, %v2776_v19  ;;  %v3106_v40 = vld [vmem:[#allocation5 + $0x294] sm:$0xf0]  ;;  %v3957_v44 = vld [vmem:[#allocation5 + $0x1c] sm:$0xf] }
  0x58   :  { %1562 = vmatpush.bf16.msrb.mxu2 %v3357_v26  ;;  %v3118_v26 = vld [vmem:[#allocation5 + $0x2ac] sm:$0xf0]  ;;  %v2794_v45 = vld [vmem:[#allocation5 + $0x24] sm:$0xf0]  ;;  %v4005_v50 = vld [vmem:[#allocation5 + $0x19c] sm:$0xf] }
  0x59   :  { %1576 = vmatpush.bf16.msrb.mxu3 %v3453_v32  ;;  %1535 = vmatmul.bf16.vlgmr.msrb.gmra.mxu0 %v4493_v36  ;;  %v3984_v32 = vld [vmem:[#allocation5 + $0xf4] sm:$0xf]  ;;  %v2890_v49 = vld [vmem:[#allocation5 + $0xe4] sm:$0xf0]  ;;  %v3954_v53 = vld [vmem:[#allocation5 + $0x4] sm:$0xf]  ;;  %v2797_v54 = vor.u32 %v3957_v44, %v2794_v45 }
  0x5a   :  { %1549 = vmatmul.bf16.vlgmr.msrb.gmra.mxu1 %v4497_v42  ;;  %1590 = vmatpush.bf16.msra.mxu0 %v3549_v51  ;;  %v2905_v43 = vor.u32 %v3984_v32, %v2902_v33  ;;  %v2986_v51 = vld [vmem:[#allocation5 + $0x1a4] sm:$0xf0]  ;;  %v2782_v55 = vld [vmem:[#allocation5 + $0xc] sm:$0xf0]  ;;  %v3094_v57 = vld [vmem:[#allocation5 + $0x27c] sm:$0xf0] }
  0x5b   :  { %1597 = vmatpush.bf16.msra.mxu1 %v2869_v27  ;;  %1563 = vmatmul.bf16.vlgmr.msrb.gmra.mxu2 %v4495_v41  ;;  %v2917_v27 = vor.u32 %v3987_v17, %v2914_v18  ;;  %v3978_v59 = vld [vmem:[#allocation5 + $0xc4] sm:$0xf]  ;;  %v2989_v63 = vor.u32 %v4005_v50, %v2986_v51  ;;  %v3250_v0 = vld [vmem:[#allocation5 + $0x3b4] sm:$0xf0]  ;;  %v2974_v5 = vld [vmem:[#allocation5 + $0x18c] sm:$0xf0]  ;;  %v2785_v9 = vor.u32 %v3954_v53, %v2782_v55 }
  0x5c   :  { %1611 = vmatpush.bf16.msra.mxu2 %v2965_v31  ;;  %1577 = vmatmul.bf16.vlgmr.msrb.gmra.mxu3 %v4499_v46  ;;  %v3013_v31 = vor.u32 %v4011_v22, %v3010_v23  ;;  %v3346_v3 = vld [vmem:[#allocation5 + $0x474] sm:$0xf0]  ;;  %v4002_v4 = vld [vmem:[#allocation5 + $0x184] sm:$0xf]  ;;  %v4119_v7 = vld [vmem:[#allocation5 + $0x52c] sm:$0xf] }
  0x5d   :  { %1625 = vmatpush.bf16.msra.mxu3 %v3061_v37  ;;  %v3121_v37 = vor.u32 %v4038_v25, %v3118_v26  ;;  %v3442_v10 = vld [vmem:[#allocation5 + $0x534] sm:$0xf0]  ;;  %v2977_v17 = vor.u32 %v4002_v4, %v2974_v5  ;;  %v4068_v18 = vld [vmem:[#allocation5 + $0x394] sm:$0xf]  ;;  %v3238_v19 = vld [vmem:[#allocation5 + $0x39c] sm:$0xf0] }
  0x5e   :  { %1639 = vmatpush.bf16.msrb.mxu0 %v3157_v56  ;;  %v4032_v56 = vld [vmem:[#allocation5 + $0x274] sm:$0xf]  ;;  %v3334_v22 = vld [vmem:[#allocation5 + $0x45c] sm:$0xf0]  ;;  %v4026_v26 = vld [vmem:[#allocation5 + $0x244] sm:$0xf]  ;;  %v3241_v28 = vor.u32 %v4068_v18, %v3238_v19 }
  0x5f   :  { %1598 = vmatpush.bf16.msra.mxu1 %v2857_v47  ;;  %v3001_v47 = vor.u32 %v4008_v34, %v2998_v35  ;;  %v4092_v21 = vld [vmem:[#allocation5 + $0x454] sm:$0xf]  ;;  %v3430_v25 = vld [vmem:[#allocation5 + $0x51c] sm:$0xf0]  ;;  %v4143_v29 = vld [vmem:[#allocation5 + $0x5ec] sm:$0xf] }
  0x60   :  { %1612 = vmatpush.bf16.msra.mxu2 %v2953_v48  ;;  %v3981_v48 = vld [vmem:[#allocation5 + $0xdc] sm:$0xf]  ;;  %v3337_v32 = vor.u32 %v4092_v21, %v3334_v22  ;;  %v3226_v34 = vld [vmem:[#allocation5 + $0x384] sm:$0xf0]  ;;  %v4062_v50 = vld [vmem:[#allocation5 + $0x364] sm:$0xf] }
  0x61   :  { %1626 = vmatpush.bf16.msra.mxu3 %v3049_v52  ;;  %v3109_v52 = vor.u32 %v4035_v39, %v3106_v40  ;;  %v2893_v58 = vor.u32 %v3981_v48, %v2890_v49  ;;  %v4065_v33 = vld [vmem:[#allocation5 + $0x37c] sm:$0xf]  ;;  %v3526_v48 = vld [vmem:[#allocation5 + $0x5dc] sm:$0xf0]  ;;  %v3214_v51 = vld [vmem:[#allocation5 + $0x36c] sm:$0xf0] }
  0x62   :  { %1640 = vmatpush.bf16.msrb.mxu0 %v3145_v6  ;;  %v3097_v6 = vor.u32 %v4032_v56, %v3094_v57  ;;  %v4113_v40 = vld [vmem:[#allocation5 + $0x4fc] sm:$0xf]  ;;  %v3229_v45 = vor.u32 %v4065_v33, %v3226_v34  ;;  %v4086_v53 = vld [vmem:[#allocation5 + $0x424] sm:$0xf]  ;;  %v3406_v56 = vld [vmem:[#allocation5 + $0x4ec] sm:$0xf0] }
  0x63   :  { %1599 = vmatpush.bf16.msra.mxu1 %v2845_v61  ;;  %v2878_v61 = vld [vmem:[#allocation5 + $0xcc] sm:$0xf0]  ;;  %v4110_v55 = vld [vmem:[#allocation5 + $0x4e4] sm:$0xf]  ;;  %v3298_v4 = vld [vmem:[#allocation5 + $0x414] sm:$0xf0] }
  0x64   :  { %1613 = vmatpush.bf16.msra.mxu2 %v2941_v62  ;;  %v4071_v62 = vld [vmem:[#allocation5 + $0x3ac] sm:$0xf]  ;;  %v2881_v13 = vor.u32 %v3978_v59, %v2878_v61  ;;  %v4137_v59 = vld [vmem:[#allocation5 + $0x5bc] sm:$0xf]  ;;  %v3514_v61 = vld [vmem:[#allocation5 + $0x5c4] sm:$0xf0] }
  0x65   :  { %1627 = vmatpush.bf16.msra.mxu3 %v3037_v1  ;;  %v4095_v1 = vld [vmem:[#allocation5 + $0x46c] sm:$0xf]  ;;  %v3253_v15 = vor.u32 %v4071_v62, %v3250_v0  ;;  %v3202_v0 = vld [vmem:[#allocation5 + $0x354] sm:$0xf0]  ;;  %v3286_v18 = vld [vmem:[#allocation5 + $0x3fc] sm:$0xf0] }
  0x66   :  { %1641 = vmatpush.bf16.msrb.mxu0 %v3133_v20  ;;  %v3445_v20 = vor.u32 %v4119_v7, %v3442_v10  ;;  %v4107_v5 = vld [vmem:[#allocation5 + $0x4cc] sm:$0xf]  ;;  %v3517_v7 = vor.u32 %v4137_v59, %v3514_v61  ;;  %v4134_v10 = vld [vmem:[#allocation5 + $0x5a4] sm:$0xf]  ;;  %v4104_v19 = vld [vmem:[#allocation5 + $0x4b4] sm:$0xf] }
  0x67   :  { %1600 = vmatpush.bf16.msra.mxu1 %v2833_v11  ;;  %v4029_v11 = vld [vmem:[#allocation5 + $0x25c] sm:$0xf]  ;;  %v3370_v33 = vld [vmem:[#allocation5 + $0x4a4] sm:$0xf0]  ;;  %s2725_s8 = sshll.u32 %s4423_s30, 4  ;;  %s2727_s11 = sshll.u32 %s4555_s7, 4  ;;  %s2726_s8 = int_to_ptr.vmem [resolvable:$true] %s2725_s8  ;;  %s2728_s11 = int_to_ptr.hbm [resolvable:$true] %s2727_s11 }
  0x68   :  { %1614 = vmatpush.bf16.msra.mxu2 %v2929_v12  ;;  %v3082_v12 = vld [vmem:[#allocation5 + $0x264] sm:$0xf0]  ;;  %v4125_v59 = vld [vmem:[#allocation5 + $0x55c] sm:$0xf]  ;;  %s4425_s12 = smov 8  }
  0x69   :  { %1628 = vmatpush.bf16.msra.mxu3 %v3025_v16  ;;  %3558 = vmatmul.msk.bf16.vlgmr.msra.gmra.mxu0 %vm1467_vm0, %v4505_v30  ;;  %v3349_v16 = vor.u32 %v4095_v1, %v3346_v3  ;;  %v3085_v23 = vor.u32 %v4029_v11, %v3082_v12  ;;  %v3409_v1 = vor.u32 %v4110_v55, %v3406_v56  ;;  %v4083_v3 = vld [vmem:[#allocation5 + $0x40c] sm:$0xf]  ;;  %v3502_v11 = vld [vmem:[#allocation5 + $0x5ac] sm:$0xf0]  ;;  %v3466_v61 = vld [vmem:[#allocation5 + $0x564] sm:$0xf0] }
  0x6a   :  { %1642 = vmatpush.bf16.msrb.mxu0 %v3121_v37  ;;  %v4089_v37 = vld [vmem:[#allocation5 + $0x43c] sm:$0xf]  ;;  %v3301_v12 = vor.u32 %v4083_v3, %v3298_v4  ;;  %v3505_v21 = vor.u32 %v4134_v10, %v3502_v11  ;;  %v2968_v56 = vld [vmem:[#allocation5 + $0x170] sm:$0xf]  ;;  %v3998_v10 = vld [vmem:[#allocation5 + $0x160] sm:$0xf0] }
  0x6b   :  { %1601 = vmatpush.bf16.msra.mxu1 %v2821_v24  ;;  %v4116_v24 = vld [vmem:[#allocation5 + $0x514] sm:$0xf]  ;;  %v4049_v3 = vld [vmem:[#allocation5 + $0x2f8] sm:$0xf0]  ;;  %v4122_v11 = vld [vmem:[#allocation5 + $0x544] sm:$0xf] }
  0x6c   :  { %1615 = vmatpush.bf16.msra.mxu2 %v2917_v27  ;;  %v3070_v27 = vld [vmem:[#allocation5 + $0x24c] sm:$0xf0]  ;;  %v3433_v35 = vor.u32 %v4116_v24, %v3430_v25  ;;  %v3490_v24 = vld [vmem:[#allocation5 + $0x594] sm:$0xf0] }
  0x6d   :  { %1629 = vmatpush.bf16.msra.mxu3 %v3013_v31  ;;  %v3538_v31 = vld [vmem:[#allocation5 + $0x5f4] sm:$0xf0]  ;;  %v3073_v39 = vor.u32 %v4026_v26, %v3070_v27  ;;  %v4053_v26 = vld [vmem:[#allocation5 + $0x31c] sm:$0xf]  ;;  %v3178_v27 = vld [vmem:[#allocation5 + $0x324] sm:$0xf0] }
  0x6e   :  { %1643 = vmatpush.bf16.msrb.mxu0 %v3109_v52  ;;  %v3541_v44 = vor.u32 %v4143_v29, %v3538_v31  ;;  %v4077_v29 = vld [vmem:[#allocation5 + $0x3dc] sm:$0xf]  ;;  %v3274_v31 = vld [vmem:[#allocation5 + $0x3e4] sm:$0xf0] }
  0x6f   :  { %1602 = vmatpush.bf16.msra.mxu1 %v2809_v38  ;;  %v3322_v38 = vld [vmem:[#allocation5 + $0x444] sm:$0xf0] }
  0x70   :  { %1616 = vmatpush.bf16.msra.mxu2 %v2905_v43  ;;  %v3418_v43 = vld [vmem:[#allocation5 + $0x504] sm:$0xf0]  ;;  %v3325_v49 = vor.u32 %v4089_v37, %v3322_v38  ;;  %v4050_v37 = vld [vmem:[#allocation5 + $0x304] sm:$0xf]  ;;  %v4128_v38 = vld [vmem:[#allocation5 + $0x574] sm:$0xf] }
  0x71   :  { %1630 = vmatpush.bf16.msra.mxu3 %v3001_v47  ;;  %v4140_v47 = vld [vmem:[#allocation5 + $0x5d4] sm:$0xf]  ;;  %v3421_v52 = vor.u32 %v4113_v40, %v3418_v43  ;;  %v3277_v40 = vor.u32 %v4077_v29, %v3274_v31  ;;  %v3166_v43 = vld [vmem:[#allocation5 + $0x30c] sm:$0xf0]  ;;  %v4022_v31 = vld [vmem:[#allocation5 + $0x220] sm:$0xf0] }
  0x72   :  { %1644 = vmatpush.bf16.msrb.mxu0 %v3097_v6  ;;  %v3529_v57 = vor.u32 %v4140_v47, %v3526_v48  ;;  %v3394_v6 = vld [vmem:[#allocation5 + $0x4d4] sm:$0xf0]  ;;  %v2872_v48 = vld [vmem:[#allocation5 + $0xb0] sm:$0xf]  ;;  %v3169_v55 = vor.u32 %v4050_v37, %v3166_v43  ;;  %v3968_v37 = vld [vmem:[#allocation5 + $0x70] sm:$0xf0] }
  0x73   :  { %1603 = vmatpush.bf16.msra.mxu1 %v2797_v54  ;;  %v3310_v54 = vld [vmem:[#allocation5 + $0x42c] sm:$0xf0]  ;;  %v3040_v43 = vld [vmem:[#allocation5 + $0x200] sm:$0xf] }
  0x74   :  { %1617 = vmatpush.bf16.msra.mxu2 %v2893_v58  ;;  %v3217_v58 = vor.u32 %v4062_v50, %v3214_v51  ;;  %v3313_v62 = vor.u32 %v4086_v53, %v3310_v54  ;;  %v3550_v50 = vld [vmem:[#allocation5 + $0x60c] sm:$0xf0]  ;;  %v3977_v51 = vld [vmem:[#allocation5 + $0xb8] sm:$0xf0] }
  0x75   :  { %1631 = vmatpush.bf16.msra.mxu3 %v2989_v63  ;;  %v4059_v63 = vld [vmem:[#allocation5 + $0x34c] sm:$0xf]  ;;  %v3358_v53 = vld [vmem:[#allocation5 + $0x48c] sm:$0xf0] }
  0x76   :  { %1645 = vmatpush.bf16.msrb.mxu0 %v3085_v23  ;;  %v4131_v23 = vld [vmem:[#allocation5 + $0x58c] sm:$0xf] }
  0x77   :  { %1604 = vmatpush.bf16.msra.mxu1 %v2785_v9  ;;  %v3205_v9 = vor.u32 %v4059_v63, %v3202_v0  ;;  %v3493_v34 = vor.u32 %v4131_v23, %v3490_v24  ;;  %v2873_v63 = vor.u32 %v3977_v51, %v2872_v48  ;;  %v2944_v24 = vld [vmem:[#allocation5 + $0x140] sm:$0xf]  ;;  %v3124_v48 = vld [vmem:[#allocation5 + $0x2a8] sm:$0xf]  ;;  %v2824_v51 = vld [vmem:[#allocation5 + $0x50] sm:$0xf] }
  0x78   :  { %1618 = vmatpush.bf16.msra.mxu2 %v2881_v13  ;;  %v4056_v13 = vld [vmem:[#allocation5 + $0x334] sm:$0xf] }
  0x79   :  { %1632 = vmatpush.bf16.msra.mxu3 %v2977_v17  ;;  %v4080_v17 = vld [vmem:[#allocation5 + $0x3f4] sm:$0xf] }
  0x7a   :  { %1605 = vmatmul.bf16.vlgmr.msra.gmra.mxu1 %v4481_v60  ;;  %1646 = vmatpush.bf16.msrb.mxu0 %v3073_v39  ;;  %v3289_v25 = vor.u32 %v4080_v17, %v3286_v18  ;;  %v3478_v39 = vld [vmem:[#allocation5 + $0x57c] sm:$0xf0]  ;;  %v4025_v17 = vld [vmem:[#allocation5 + $0x238] sm:$0xf0]  ;;  %v3148_v18 = vld [vmem:[#allocation5 + $0x2d8] sm:$0xf] }
  0x7b   :  { %1653 = vmatpush.bf16.msrb.mxu1 %v3253_v15  ;;  %1619 = vmatmul.bf16.vlgmr.msra.gmra.mxu2 %v4487_v8  ;;  %v3190_v15 = vld [vmem:[#allocation5 + $0x33c] sm:$0xf0]  ;;  %v3481_v54 = vor.u32 %v4128_v38, %v3478_v39  ;;  %v2932_v38 = vld [vmem:[#allocation5 + $0x128] sm:$0xf]  ;;  %v3992_v39 = vld [vmem:[#allocation5 + $0x130] sm:$0xf0] }
  0x7c   :  { %1667 = vmatpush.bf16.msrb.mxu2 %v3349_v16  ;;  %1633 = vmatmul.bf16.vlgmr.msra.gmra.mxu3 %v4483_v2  ;;  %v3397_v16 = vor.u32 %v4107_v5, %v3394_v6  ;;  %v3193_v22 = vor.u32 %v4056_v13, %v3190_v15  ;;  %v2860_v5 = vld [vmem:[#allocation5 + $0x98] sm:$0xf]  ;;  %v3974_v6 = vld [vmem:[#allocation5 + $0xa0] sm:$0xf0]  ;;  %v3064_v13 = vld [vmem:[#allocation5 + $0x230] sm:$0xf] }
  0x7d   :  { %1681 = vmatpush.bf16.msrb.mxu3 %v3445_v20  ;;  %1647 = vmatmul.bf16.vlgmr.msrb.gmra.mxu0 %v4489_v14  ;;  %v3382_v20 = vld [vmem:[#allocation5 + $0x4bc] sm:$0xf0] }
  0x7e   :  { %1695 = vmatpush.bf16.msra.mxu0 %v3541_v44  ;;  %v4074_v44 = vld [vmem:[#allocation5 + $0x3c4] sm:$0xf] }
  0x7f   :  { %1654 = vmatpush.bf16.msrb.mxu1 %v3241_v28  ;;  %v3385_v28 = vor.u32 %v4104_v19, %v3382_v20  ;;  %v4046_v19 = vld [vmem:[#allocation5 + $0x2e0] sm:$0xf0] }
  0x80   :  { %1668 = vmatpush.bf16.msrb.mxu2 %v3337_v32  ;;  %v4101_v32 = vld [vmem:[#allocation5 + $0x49c] sm:$0xf] }
  0x81   :  { %1682 = vmatpush.bf16.msrb.mxu3 %v3433_v35  ;;  %v3181_v35 = vor.u32 %v4053_v26, %v3178_v27  ;;  %v3373_v47 = vor.u32 %v4101_v32, %v3370_v33  ;;  %v3065_v26 = vor.u32 %v4025_v17, %v3064_v13  ;;  %v3052_v27 = vld [vmem:[#allocation5 + $0x218] sm:$0xf]  ;;  %v3136_v32 = vld [vmem:[#allocation5 + $0x2c0] sm:$0xf]  ;;  %v4043_v33 = vld [vmem:[#allocation5 + $0x2c8] sm:$0xf0] }
  0x82   :  { %1696 = vmatpush.bf16.msra.mxu0 %v3529_v57  ;;  %v4001_v57 = vld [vmem:[#allocation5 + $0x178] sm:$0xf0]  ;;  %v2896_v17 = vld [vmem:[#allocation5 + $0xe0] sm:$0xf] }
  0x83   :  { %1655 = vmatpush.bf16.msrb.mxu1 %v3229_v45  ;;  %v3262_v45 = vld [vmem:[#allocation5 + $0x3cc] sm:$0xf0]  ;;  %v2969_v4 = vor.u32 %v4001_v57, %v2968_v56  ;;  %v3028_v56 = vld [vmem:[#allocation5 + $0x1e8] sm:$0xf] }
  0x84   :  { %1669 = vmatpush.bf16.msrb.mxu2 %v3325_v49  ;;  %v4146_v49 = vld [vmem:[#allocation5 + $0x604] sm:$0xf] }
  0x85   :  { %1683 = vmatpush.bf16.msrb.mxu3 %v3421_v52  ;;  %v4098_v52 = vld [vmem:[#allocation5 + $0x484] sm:$0xf] }
  0x86   :  { %1697 = vmatpush.bf16.msra.mxu0 %v3517_v7  ;;  %v3361_v0 = vor.u32 %v4098_v52, %v3358_v53  ;;  %v3469_v7 = vor.u32 %v4125_v59, %v3466_v61  ;;  %v3965_v52 = vld [vmem:[#allocation5 + $0x58] sm:$0xf0]  ;;  %v2920_v53 = vld [vmem:[#allocation5 + $0x110] sm:$0xf]  ;;  %v4016_v59 = vld [vmem:[#allocation5 + $0x1f0] sm:$0xf0] }
  0x87   :  { %1656 = vmatpush.bf16.msrb.mxu1 %v3217_v58  ;;  %v3265_v58 = vor.u32 %v4074_v44, %v3262_v45  ;;  %v3137_v44 = vor.u32 %v4043_v33, %v3136_v32  ;;  %v3112_v61 = vld [vmem:[#allocation5 + $0x290] sm:$0xf]  ;;  %v2884_v32 = vld [vmem:[#allocation5 + $0xc8] sm:$0xf]  ;;  %v3980_v33 = vld [vmem:[#allocation5 + $0xd0] sm:$0xf0] }
  0x88   :  { %1670 = vmatpush.bf16.msrb.mxu2 %v3313_v62  ;;  %v3553_v62 = vor.u32 %v4146_v49, %v3550_v50  ;;  %v4040_v49 = vld [vmem:[#allocation5 + $0x2b0] sm:$0xf0]  ;;  %v2933_v50 = vor.u32 %v3992_v39, %v2932_v38 }
  0x89   :  { %1684 = vmatpush.bf16.msrb.mxu3 %v3409_v1  ;;  %v3160_v1 = vld [vmem:[#allocation5 + $0x2f0] sm:$0xf]  ;;  %v3125_v57 = vor.u32 %v4040_v49, %v3124_v48  ;;  %v3076_v48 = vld [vmem:[#allocation5 + $0x248] sm:$0xf]  ;;  %v4028_v49 = vld [vmem:[#allocation5 + $0x250] sm:$0xf0] }
  0x8a   :  { %1698 = vmatpush.bf16.msra.mxu0 %v3505_v21  ;;  %v3161_v15 = vor.u32 %v4049_v3, %v3160_v1  ;;  %v2848_v21 = vld [vmem:[#allocation5 + $0x80] sm:$0xf]  ;;  %v3962_v1 = vld [vmem:[#allocation5 + $0x40] sm:$0xf0]  ;;  %v2908_v3 = vld [vmem:[#allocation5 + $0xf8] sm:$0xf] }
  0x8b   :  { %1657 = vmatpush.bf16.msrb.mxu1 %v3205_v9  ;;  %v2956_v9 = vld [vmem:[#allocation5 + $0x158] sm:$0xf] }
  0x8c   :  { %1671 = vmatpush.bf16.msrb.mxu2 %v3301_v12  ;;  %v3454_v12 = vld [vmem:[#allocation5 + $0x54c] sm:$0xf0]  ;;  %v2957_v20 = vor.u32 %v3998_v10, %v2956_v9  ;;  %v4013_v10 = vld [vmem:[#allocation5 + $0x1d8] sm:$0xf0] }
  0x8d   :  { %1685 = vmatpush.bf16.msrb.mxu3 %v3397_v16  ;;  %v2861_v16 = vor.u32 %v3974_v6, %v2860_v5  ;;  %v3457_v23 = vor.u32 %v4122_v11, %v3454_v12  ;;  %v3029_v5 = vor.u32 %v4016_v59, %v3028_v56  ;;  %v3016_v6 = vld [vmem:[#allocation5 + $0x1d0] sm:$0xf]  ;;  %v3100_v11 = vld [vmem:[#allocation5 + $0x278] sm:$0xf]  ;;  %v4034_v12 = vld [vmem:[#allocation5 + $0x280] sm:$0xf0]  ;;  %v3077_v59 = vor.u32 %v4028_v49, %v3076_v48 }
  0x8e   :  { %1699 = vmatpush.bf16.msra.mxu0 %v3493_v34  ;;  %v4094_v56 = vld [vmem:[#allocation5 + $0x460] sm:$0xf0]  ;;  %v3292_v48 = vld [vmem:[#allocation5 + $0x3f8] sm:$0xf] }
  0x8f   :  { %1658 = vmatpush.bf16.msrb.mxu1 %v3193_v22  ;;  %v3971_v22 = vld [vmem:[#allocation5 + $0x88] sm:$0xf0] }
  0x90   :  { %1672 = vmatpush.bf16.msrb.mxu2 %v3289_v25  ;;  %v3995_v25 = vld [vmem:[#allocation5 + $0x148] sm:$0xf0]  ;;  %v2849_v29 = vor.u32 %v3971_v22, %v2848_v21  ;;  %v3101_v21 = vor.u32 %v4034_v12, %v3100_v11 }
  0x91   :  { %1686 = vmatpush.bf16.msrb.mxu3 %v3385_v28  ;;  %v3149_v28 = vor.u32 %v4046_v19, %v3148_v18  ;;  %v2945_v34 = vor.u32 %v3995_v25, %v2944_v24  ;;  %v3983_v18 = vld [vmem:[#allocation5 + $0xe8] sm:$0xf0]  ;;  %v3017_v19 = vor.u32 %v4013_v10, %v3016_v6  ;;  %v3088_v24 = vld [vmem:[#allocation5 + $0x260] sm:$0xf]  ;;  %v4142_v6 = vld [vmem:[#allocation5 + $0x5e0] sm:$0xf0] }
  0x92   :  { %1700 = vmatpush.bf16.msra.mxu0 %v3481_v54  ;;  %v3989_v54 = vld [vmem:[#allocation5 + $0x118] sm:$0xf0]  ;;  %v4031_v25 = vld [vmem:[#allocation5 + $0x268] sm:$0xf0] }
  0x93   :  { %1659 = vmatpush.bf16.msrb.mxu1 %v3181_v35  ;;  %v2836_v35 = vld [vmem:[#allocation5 + $0x68] sm:$0xf]  ;;  %v3089_v38 = vor.u32 %v4031_v25, %v3088_v24  ;;  %v4091_v10 = vld [vmem:[#allocation5 + $0x448] sm:$0xf0]  ;;  %v3208_v24 = vld [vmem:[#allocation5 + $0x350] sm:$0xf] }
  0x94   :  { %1673 = vmatpush.bf16.msrb.mxu2 %v3277_v40  ;;  %v3053_v40 = vor.u32 %v4022_v31, %v3052_v27  ;;  %v2837_v45 = vor.u32 %v3968_v37, %v2836_v35  ;;  %v2788_v27 = vld [vmem:[#allocation5 + $0x8] sm:$0xf]  ;;  %v4073_v31 = vld [vmem:[#allocation5 + $0x3b8] sm:$0xf0]  ;;  %v3352_v35 = vld [vmem:[#allocation5 + $0x470] sm:$0xf] }
  0x95   :  { %1687 = vmatpush.bf16.msrb.mxu3 %v3373_v47  ;;  %v4019_v47 = vld [vmem:[#allocation5 + $0x208] sm:$0xf0]  ;;  %v4097_v37 = vld [vmem:[#allocation5 + $0x478] sm:$0xf0]  ;;  %v3424_v25 = vld [vmem:[#allocation5 + $0x500] sm:$0xf] }
  0x96   :  { %1701 = vmatpush.bf16.msra.mxu0 %v3469_v7 }
  0x97   :  { %1660 = vmatpush.bf16.msrb.mxu1 %v3169_v55  ;;  %v3041_v55 = vor.u32 %v4019_v47, %v3040_v43  ;;  %v4007_v43 = vld [vmem:[#allocation5 + $0x1a8] sm:$0xf0]  ;;  %v3244_v47 = vld [vmem:[#allocation5 + $0x398] sm:$0xf] }
  0x98   :  { %1674 = vmatpush.bf16.msrb.mxu2 %v3265_v58  ;;  %v2825_v58 = vor.u32 %v3965_v52, %v2824_v51  ;;  %v4070_v51 = vld [vmem:[#allocation5 + $0x3a0] sm:$0xf0]  ;;  %v3544_v52 = vld [vmem:[#allocation5 + $0x5f0] sm:$0xf] }
  0x99   :  { %1688 = vmatpush.bf16.msrb.mxu3 %v3361_v0  ;;  %v2812_v0 = vld [vmem:[#allocation5 + $0x38] sm:$0xf] }
  0x9a   :  { %1661 = vmatmul.bf16.vlgmr.msrb.gmra.mxu1 %v4493_v36  ;;  %1702 = vmatpush.bf16.msra.mxu0 %v3457_v23  ;;  %v2813_v9 = vor.u32 %v3962_v1, %v2812_v0  ;;  %v4010_v23 = vld [vmem:[#allocation5 + $0x1c0] sm:$0xf0]  ;;  %v4121_v0 = vld [vmem:[#allocation5 + $0x538] sm:$0xf0] }
  0x9b   :  { %1716 = vmatpush.bf16.msra.mxu1 %v3553_v62  ;;  %1675 = vmatmul.bf16.vlgmr.msrb.gmra.mxu2 %v4497_v42  ;;  %v4037_v62 = vld [vmem:[#allocation5 + $0x298] sm:$0xf0] }
  0x9c   :  { %1723 = vmatpush.bf16.msra.mxu2 %v2873_v63  ;;  %1689 = vmatmul.bf16.vlgmr.msrb.gmra.mxu3 %v4495_v41  ;;  %v2921_v63 = vor.u32 %v3989_v54, %v2920_v53  ;;  %v3113_v7 = vor.u32 %v4037_v62, %v3112_v61  ;;  %v4145_v53 = vld [vmem:[#allocation5 + $0x5f8] sm:$0xf0]  ;;  %v3245_v61 = vor.u32 %v4070_v51, %v3244_v47  ;;  %v3232_v62 = vld [vmem:[#allocation5 + $0x380] sm:$0xf] }
  0x9d   :  { %1737 = vmatpush.bf16.msra.mxu3 %v2969_v4  ;;  %1703 = vmatmul.bf16.vlgmr.msra.gmra.mxu0 %v4499_v46  ;;  %v3986_v4 = vld [vmem:[#allocation5 + $0x100] sm:$0xf0]  ;;  %v3545_v1 = vor.u32 %v4145_v53, %v3544_v52  ;;  %v4133_v47 = vld [vmem:[#allocation5 + $0x598] sm:$0xf0]  ;;  %v3184_v51 = vld [vmem:[#allocation5 + $0x320] sm:$0xf] }
  0x9e   :  { %1751 = vmatpush.bf16.msrb.mxu0 %v3065_v26  ;;  %v2909_v13 = vor.u32 %v3986_v4, %v2908_v3  ;;  %v2897_v26 = vor.u32 %v3983_v18, %v2896_v17  ;;  %v4067_v4 = vld [vmem:[#allocation5 + $0x388] sm:$0xf0]  ;;  %v3400_v52 = vld [vmem:[#allocation5 + $0x4d0] sm:$0xf]  ;;  %v4109_v53 = vld [vmem:[#allocation5 + $0x4d8] sm:$0xf0] }
  0x9f   :  { %1765 = vmatpush.bf16.msrb.mxu1 %v3161_v15  ;;  %v2800_v15 = vld [vmem:[#allocation5 + $0x20] sm:$0xf]  ;;  %v3233_v12 = vor.u32 %v4067_v4, %v3232_v62  ;;  %v3388_v4 = vld [vmem:[#allocation5 + $0x4b8] sm:$0xf] }
  0xa0   :  { %1724 = vmatpush.bf16.msra.mxu2 %v2861_v16  ;;  %v3959_v16 = vld [vmem:[#allocation5 + $0x28] sm:$0xf0] }
  0xa1   :  { %1738 = vmatpush.bf16.msra.mxu3 %v2957_v20  ;;  %v3004_v20 = vld [vmem:[#allocation5 + $0x1b8] sm:$0xf]  ;;  %v2801_v22 = vor.u32 %v3959_v16, %v2800_v15  ;;  %v4118_v16 = vld [vmem:[#allocation5 + $0x520] sm:$0xf0] }
  0xa2   :  { %1752 = vmatpush.bf16.msrb.mxu0 %v3053_v40  ;;  %v2992_v40 = vld [vmem:[#allocation5 + $0x1a0] sm:$0xf]  ;;  %v3436_v15 = vld [vmem:[#allocation5 + $0x518] sm:$0xf] }
  0xa3   :  { %1766 = vmatpush.bf16.msrb.mxu1 %v3149_v28  ;;  %v3956_v28 = vld [vmem:[#allocation5 + $0x10] sm:$0xf0]  ;;  %v2993_v54 = vor.u32 %v4007_v43, %v2992_v40 }
  0xa4   :  { %1725 = vmatpush.bf16.msra.mxu2 %v2849_v29  ;;  %v3256_v29 = vld [vmem:[#allocation5 + $0x3b0] sm:$0xf]  ;;  %v2789_v39 = vor.u32 %v3956_v28, %v2788_v27 }
  0xa5   :  { %1739 = vmatpush.bf16.msra.mxu3 %v2945_v34  ;;  %v3005_v34 = vor.u32 %v4010_v23, %v3004_v20  ;;  %v3520_v20 = vld [vmem:[#allocation5 + $0x5c0] sm:$0xf] }
  0xa6   :  { %1753 = vmatpush.bf16.msrb.mxu0 %v3041_v55  ;;  %v3340_v55 = vld [vmem:[#allocation5 + $0x458] sm:$0xf] }
  0xa7   :  { %1767 = vmatpush.bf16.msrb.mxu1 %v3137_v44  ;;  %v3257_v44 = vor.u32 %v4073_v31, %v3256_v29  ;;  %v3341_v3 = vor.u32 %v4094_v56, %v3340_v55  ;;  %v4061_v29 = vld [vmem:[#allocation5 + $0x358] sm:$0xf0]  ;;  %v3508_v31 = vld [vmem:[#allocation5 + $0x5a8] sm:$0xf]  ;;  %v4055_v56 = vld [vmem:[#allocation5 + $0x328] sm:$0xf0] }
  0xa8   :  { %1726 = vmatpush.bf16.msra.mxu2 %v2837_v45  ;;  %v2885_v45 = vor.u32 %v3980_v33, %v2884_v32  ;;  %v4136_v32 = vld [vmem:[#allocation5 + $0x5b0] sm:$0xf0]  ;;  %v3304_v33 = vld [vmem:[#allocation5 + $0x410] sm:$0xf] }
  0xa9   :  { %1740 = vmatpush.bf16.msra.mxu3 %v2933_v50  ;;  %v3353_v50 = vor.u32 %v4097_v37, %v3352_v35  ;;  %v3209_v35 = vor.u32 %v4061_v29, %v3208_v24  ;;  %v3196_v37 = vld [vmem:[#allocation5 + $0x338] sm:$0xf]  ;;  %v3509_v40 = vor.u32 %v4136_v32, %v3508_v31  ;;  %v4170_v31 = vld [vmem:[#allocation8 + $0xac] sm:$0xf]  ;;  %v3649_v32 = vld [vmem:[#allocation8 + $0xb4] sm:$0xf0] }
  0xaa   :  { %3559 = vmatmul.msk.bf16.vlgmr.msra.gmra.mxu1 %vm1467_vm0, %v4505_v30  ;;  %1754 = vmatpush.bf16.msrb.mxu0 %v3029_v5  ;;  %v3532_v5 = vld [vmem:[#allocation5 + $0x5d8] sm:$0xf] }
  0xab   :  { %1768 = vmatpush.bf16.msrb.mxu1 %v3125_v57  ;;  %v2980_v57 = vld [vmem:[#allocation5 + $0x188] sm:$0xf]  ;;  %v3533_v17 = vor.u32 %v4142_v6, %v3532_v5  ;;  %v4106_v5 = vld [vmem:[#allocation5 + $0x4c0] sm:$0xf0] }
  0xac   :  { %1727 = vmatpush.bf16.msra.mxu2 %v2825_v58  ;;  %v4004_v58 = vld [vmem:[#allocation5 + $0x190] sm:$0xf0] }
  0xad   :  { %1741 = vmatpush.bf16.msra.mxu3 %v2921_v63  ;;  %v3448_v63 = vld [vmem:[#allocation5 + $0x530] sm:$0xf] }
  0xae   :  { %1755 = vmatpush.bf16.msrb.mxu0 %v3017_v19  ;;  %v3449_v11 = vor.u32 %v4121_v0, %v3448_v63  ;;  %v4064_v19 = vld [vmem:[#allocation5 + $0x370] sm:$0xf0]  ;;  %v3401_v63 = vor.u32 %v4109_v53, %v3400_v52  ;;  %v3172_v0 = vld [vmem:[#allocation5 + $0x308] sm:$0xf] }
  0xaf   :  { %1769 = vmatpush.bf16.msrb.mxu1 %v3113_v7  ;;  %v2981_v7 = vor.u32 %v4004_v58, %v2980_v57  ;;  %v3484_v57 = vld [vmem:[#allocation5 + $0x578] sm:$0xf]  ;;  %v4130_v58 = vld [vmem:[#allocation5 + $0x580] sm:$0xf0] }
  0xb0   :  { %1728 = vmatpush.bf16.msra.mxu2 %v2813_v9  ;;  %v3328_v9 = vld [vmem:[#allocation5 + $0x440] sm:$0xf]  ;;  %v3485_v6 = vor.u32 %v4130_v58, %v3484_v57  ;;  %v3611_v57 = vld [vmem:[#allocation8 + $0x60] sm:$0xf] }
  0xb1   :  { %1742 = vmatpush.bf16.msra.mxu3 %v2909_v13  ;;  %v3220_v13 = vld [vmem:[#allocation5 + $0x368] sm:$0xf]  ;;  %v3329_v18 = vor.u32 %v4091_v10, %v3328_v9  ;;  %v3472_v10 = vld [vmem:[#allocation5 + $0x560] sm:$0xf] }
  0xb2   :  { %1756 = vmatpush.bf16.msrb.mxu0 %v3005_v34  ;;  %v3221_v23 = vor.u32 %v4064_v19, %v3220_v13  ;;  %v4085_v34 = vld [vmem:[#allocation5 + $0x418] sm:$0xf0]  ;;  %v3268_v9 = vld [vmem:[#allocation5 + $0x3c8] sm:$0xf]  ;;  %v3647_v19 = vld [vmem:[#allocation8 + $0xa8] sm:$0xf] }
  0xb3   :  { %1770 = vmatpush.bf16.msrb.mxu1 %v3101_v21  ;;  %v4139_v21 = vld [vmem:[#allocation5 + $0x5c8] sm:$0xf0]  ;;  %v3305_v43 = vor.u32 %v4085_v34, %v3304_v33  ;;  %v3556_v13 = vld [vmem:[#allocation5 + $0x608] sm:$0xf] }
  0xb4   :  { %1729 = vmatpush.bf16.msra.mxu2 %v2801_v22  ;;  %v4088_v22 = vld [vmem:[#allocation5 + $0x430] sm:$0xf0]  ;;  %v3521_v27 = vor.u32 %v4139_v21, %v3520_v20  ;;  %v4171_v20 = vld [vmem:[#allocation8 + $0xb0] sm:$0xf0]  ;;  %v3635_v34 = vld [vmem:[#allocation8 + $0x90] sm:$0xf] }
  0xb5   :  { %1743 = vmatpush.bf16.msra.mxu3 %v2897_v26  ;;  %v4115_v26 = vld [vmem:[#allocation5 + $0x508] sm:$0xf0]  ;;  %v3648_v29 = vor.u32 %v4171_v20, %v3647_v19 }
  0xb6   :  { %1757 = vmatpush.bf16.msrb.mxu0 %v2993_v54  ;;  %v1480_v62 = vpop.f32.mrf.mxu0 }
  0xb7   :  { %1771 = vmatpush.bf16.msrb.mxu1 %v3089_v38  ;;  %v3412_v38 = vld [vmem:[#allocation5 + $0x4e8] sm:$0xf] }
  0xb8   :  { %1730 = vmatpush.bf16.msra.mxu2 %v2789_v39  ;;  %v4112_v39 = vld [vmem:[#allocation5 + $0x4f0] sm:$0xf0] }
  0xb9   :  { %1744 = vmatpush.bf16.msra.mxu3 %v2885_v45  ;;  %v3496_v45 = vld [vmem:[#allocation5 + $0x590] sm:$0xf]  ;;  %v3413_v49 = vor.u32 %v4112_v39, %v3412_v38 }
  0xba   :  { %1758 = vmatpush.bf16.msrb.mxu0 %v2981_v7  ;;  %v3497_v54 = vor.u32 %v4133_v47, %v3496_v45  ;;  %v4167_v47 = vld [vmem:[#allocation8 + $0x94] sm:$0xf] }
  0xbb   :  { %1731 = vmatmul.bf16.vlgmr.msra.gmra.mxu2 %v4481_v60  ;;  %1772 = vmatpush.bf16.msrb.mxu1 %v3077_v59  ;;  %v3316_v60 = vld [vmem:[#allocation5 + $0x428] sm:$0xf]  ;;  %v3280_v59 = vld [vmem:[#allocation5 + $0x3e0] sm:$0xf] }
  0xbc   :  { %1779 = vmatpush.bf16.msrb.mxu2 %v3257_v44  ;;  %1745 = vmatmul.bf16.vlgmr.msra.gmra.mxu3 %v4487_v8  ;;  %v3437_v8 = vor.u32 %v4118_v16, %v3436_v15  ;;  %v3317_v28 = vor.u32 %v4088_v22, %v3316_v60  ;;  %v4058_v44 = vld [vmem:[#allocation5 + $0x340] sm:$0xf0]  ;;  %v4148_v15 = vld [vmem:[#allocation5 + $0x610] sm:$0xf0]  ;;  %v4523_v16 = vld [vmem:[#allocation7] sm:$0x7] }
  0xbd   :  { %1793 = vmatpush.bf16.msrb.mxu3 %v3353_v50  ;;  %1759 = vmatmul.bf16.vlgmr.msrb.gmra.mxu0 %v4483_v2  ;;  %v4082_v2 = vld [vmem:[#allocation5 + $0x400] sm:$0xf0]  ;;  %v3197_v50 = vor.u32 %v4058_v44, %v3196_v37  ;;  %v3376_v60 = vld [vmem:[#allocation5 + $0x4a0] sm:$0xf]  ;;  %v4103_v22 = vld [vmem:[#allocation5 + $0x4a8] sm:$0xf0]  ;;  %v3557_v24 = vor.u32 %v4148_v15, %v3556_v13 }
  0xbe   :  { %1773 = vmatmul.bf16.vlgmr.msrb.gmra.mxu1 %v4489_v14  ;;  %1807 = vmatpush.bf16.msra.mxu0 %v3449_v11  ;;  %v3425_v14 = vor.u32 %v4115_v26, %v3424_v25  ;;  %v3293_v55 = vor.u32 %v4082_v2, %v3292_v48  ;;  %v4127_v11 = vld [vmem:[#allocation5 + $0x568] sm:$0xf0]  ;;  %v3460_v25 = vld [vmem:[#allocation5 + $0x548] sm:$0xf]  ;;  %v4124_v26 = vld [vmem:[#allocation5 + $0x550] sm:$0xf0]  ;;  %v3377_v33 = vor.u32 %v4103_v22, %v3376_v60  ;;  %v1482_v39 = vpop.f32.mrf.mxu0 }
  0xbf   :  { %1821 = vmatpush.bf16.msra.mxu1 %v3545_v1  ;;  %v3185_v1 = vor.u32 %v4055_v56, %v3184_v51  ;;  %v4100_v37 = vld [vmem:[#allocation5 + $0x490] sm:$0xf0]  ;;  %v3461_v38 = vor.u32 %v4124_v26, %v3460_v25  ;;  %v3637_v48 = vld [vmem:[#allocation8 + $0x9c] sm:$0xf0]  ;;  %v3625_v56 = vld [vmem:[#allocation8 + $0x84] sm:$0xf0] }
  0xc0   :  { %1780 = vmatpush.bf16.msrb.mxu2 %v3245_v61  ;;  %v4079_v61 = vld [vmem:[#allocation5 + $0x3e8] sm:$0xf0]  ;;  %v3640_v52 = vor.u32 %v4167_v47, %v3637_v48  ;;  %v4156_v15 = vld [vmem:[#allocation8 + $0x38] sm:$0xf0]  ;;  %v3589_v60 = vld [vmem:[#allocation8 + $0x3c] sm:$0xf0] }
  0xc1   :  { %1794 = vmatpush.bf16.msrb.mxu3 %v3341_v3  ;;  %v4052_v3 = vld [vmem:[#allocation5 + $0x310] sm:$0xf0]  ;;  %v3281_v7 = vor.u32 %v4079_v61, %v3280_v59  ;;  %v3587_v13 = vld [vmem:[#allocation8 + $0x30] sm:$0xf] }
  0xc2   :  { %1808 = vmatpush.bf16.msra.mxu0 %v3437_v8  ;;  %v3173_v21 = vor.u32 %v4052_v3, %v3172_v0  ;;  %v3473_v8 = vor.u32 %v4127_v11, %v3472_v10  ;;  %v3613_v0 = vld [vmem:[#allocation8 + $0x6c] sm:$0xf0]  ;;  %v4158_v10 = vld [vmem:[#allocation8 + $0x4c] sm:$0xf]  ;;  %v3601_v11 = vld [vmem:[#allocation8 + $0x54] sm:$0xf0]  ;;  %v3588_v20 = vor.u32 %v4156_v15, %v3587_v13 }
  0xc3   :  { %1822 = vmatpush.bf16.msra.mxu1 %v3533_v17  ;;  %v1494_v17 = vpop.f32.mrf.mxu1  ;;  %v3721_v15 = vld [vmem:[#allocation8 + $0x144] sm:$0xf0] }
  0xc4   :  { %1781 = vmatpush.bf16.msrb.mxu2 %v3233_v12  ;;  %v4076_v12 = vld [vmem:[#allocation5 + $0x3d0] sm:$0xf0] }
  0xc5   :  { %1795 = vmatpush.bf16.msrb.mxu3 %v3329_v18  ;;  %v3389_v18 = vor.u32 %v4106_v5, %v3388_v4  ;;  %v3599_v4 = vld [vmem:[#allocation8 + $0x48] sm:$0xf]  ;;  %v4159_v5 = vld [vmem:[#allocation8 + $0x50] sm:$0xf0] }
  0xc6   :  { %1809 = vmatpush.bf16.msra.mxu0 %v3425_v14  ;;  %v4168_v14 = vld [vmem:[#allocation8 + $0x98] sm:$0xf0] }
  0xc7   :  { %1823 = vmatpush.bf16.msra.mxu1 %v3521_v27  ;;  %v376_v27 = vperm.slane %v4523_v16, 0  ;;  %v3636_v45 = vor.u32 %v4168_v14, %v3635_v34 }
  0xc8   :  { %1782 = vmatpush.bf16.msrb.mxu2 %v3221_v23  ;;  %v3269_v23 = vor.u32 %v4076_v12, %v3268_v9  ;;  %v3600_v9 = vor.u32 %v4159_v5, %v3599_v4  ;;  %v3733_v4 = vld [vmem:[#allocation8 + $0x15c] sm:$0xf0]  ;;  %v3739_v5 = vld [vmem:[#allocation8 + $0x158] sm:$0xf] }
  0xc9   :  { %1796 = vmatpush.bf16.msrb.mxu3 %v3317_v28  ;;  %v1508_v28 = vpop.f32.mrf.mxu2  ;;  %v1481_v44 = vadd.f32 %v1480_v62, %v376_v27  ;;  %v1483_v58 = vadd.f32 %v1482_v39, %v376_v27  ;;  %v3565_v39 = vld [vmem:[#allocation8 + $0xc] sm:$0xf0] }
  0xca   :  { %1810 = vmatpush.bf16.msra.mxu0 %v3413_v49  ;;  %v3623_v49 = vld [vmem:[#allocation8 + $0x78] sm:$0xf] }
  0xcb   :  { %1824 = vmatpush.bf16.msra.mxu1 %v3509_v40  ;;  %v1522_v40 = vpop.f32.mrf.mxu3  ;;  %v1496_v51 = vpop.f32.mrf.mxu1  ;;  %v1495_v53 = vadd.f32 %v1494_v17, %v1481_v44  ;;  %v3604_v17 = vor.u32 %v4158_v10, %v3601_v11  ;;  %v3719_v10 = vld [vmem:[#allocation8 + $0x138] sm:$0xf]  ;;  %v4189_v11 = vld [vmem:[#allocation8 + $0x140] sm:$0xf0] }
  0xcc   :  { %1783 = vmatpush.bf16.msrb.mxu2 %v3209_v35  ;;  %v3364_v35 = vld [vmem:[#allocation5 + $0x488] sm:$0xf]  ;;  %v3720_v13 = vor.u32 %v4189_v11, %v3719_v10 }
  0xcd   :  { %1797 = vmatpush.bf16.msrb.mxu3 %v3305_v43  ;;  %v3652_v43 = vor.u32 %v4170_v31, %v3649_v32  ;;  %v3365_v2 = vor.u32 %v4100_v37, %v3364_v35  ;;  %v1509_v62 = vadd.f32 %v1508_v28, %v1495_v53  ;;  %v3577_v31 = vld [vmem:[#allocation8 + $0x24] sm:$0xf0]  ;;  %v3563_v32 = vld [vmem:[#allocation8] sm:$0xf]  ;;  %v4195_v53 = vld [vmem:[#allocation8 + $0x170] sm:$0xf0] }
  0xce   :  { %1811 = vmatpush.bf16.msra.mxu0 %v3401_v63  ;;  %v4161_v63 = vld [vmem:[#allocation8 + $0x64] sm:$0xf] }
  0xcf   :  { %1825 = vmatpush.bf16.msra.mxu1 %v3497_v54 }
  0xd0   :  { %1784 = vmatpush.bf16.msrb.mxu2 %v3197_v50  ;;  %v4165_v50 = vld [vmem:[#allocation8 + $0x80] sm:$0xf0] }
  0xd1   :  { %1798 = vmatpush.bf16.msrb.mxu3 %v3293_v55  ;;  %v3624_v54 = vor.u32 %v4165_v50, %v3623_v49  ;;  %v4164_v55 = vld [vmem:[#allocation8 + $0x7c] sm:$0xf]  ;;  %v1510_v59 = vpop.f32.mrf.mxu2 }
  0xd2   :  { %1812 = vmatpush.bf16.msra.mxu0 %v3389_v18  ;;  %v3628_v61 = vor.u32 %v4164_v55, %v3625_v56 }
  0xd3   :  { %1826 = vmatpush.bf16.msra.mxu1 %v3485_v6  ;;  %v1497_v6 = vadd.f32 %v1496_v51, %v1483_v58  ;;  %v4196_v58 = vld [vmem:[#allocation8 + $0x178] sm:$0xf0] }
  0xd4   :  { %1785 = vmatpush.bf16.msrb.mxu2 %v3185_v1  ;;  %v1524_v1 = vpop.f32.mrf.mxu3 }
  0xd5   :  { %1799 = vmatpush.bf16.msrb.mxu3 %v3281_v7  ;;  %v1523_v7 = vadd.f32 %v1522_v40, %v1509_v62 }
  0xd6   :  { %1813 = vmatpush.bf16.msra.mxu0 %v3377_v33  ;;  %v1536_v3 = vpop.f32.mrf.mxu0  ;;  %v4150_v33 = vld [vmem:[#allocation8 + $0x8] sm:$0xf0] }
  0xd7   :  { %1827 = vmatpush.bf16.msra.mxu1 %v3473_v8  ;;  %v1550_v12 = vpop.f32.mrf.mxu1  ;;  %v1537_v18 = vadd.f32 %v1536_v3, %v1523_v7  ;;  %v3575_v8 = vld [vmem:[#allocation8 + $0x18] sm:$0xf]  ;;  %v4191_v3 = vld [vmem:[#allocation8 + $0x154] sm:$0xf]  ;;  %v4193_v7 = vld [vmem:[#allocation8 + $0x160] sm:$0xf0] }
  0xd8   :  { %1786 = vmatpush.bf16.msrb.mxu2 %v3173_v21  ;;  %v4155_v21 = vld [vmem:[#allocation8 + $0x34] sm:$0xf] }
  0xd9   :  { %1800 = vmatpush.bf16.msrb.mxu3 %v3269_v23  ;;  %v4153_v23 = vld [vmem:[#allocation8 + $0x20] sm:$0xf0]  ;;  %v3592_v26 = vor.u32 %v4155_v21, %v3589_v60  ;;  %v1551_v27 = vadd.f32 %v1550_v12, %v1537_v18  ;;  %v4188_v12 = vld [vmem:[#allocation8 + $0x13c] sm:$0xf]  ;;  %v4186_v21 = vld [vmem:[#allocation8 + $0x128] sm:$0xf0] }
  0xda   :  { %1814 = vmatpush.bf16.msra.mxu0 %v3365_v2  ;;  %v3576_v28 = vor.u32 %v4153_v23, %v3575_v8  ;;  %v3724_v18 = vor.u32 %v4188_v12, %v3721_v15  ;;  %v4185_v60 = vld [vmem:[#allocation8 + $0x124] sm:$0xf]  ;;  %v3709_v8 = vld [vmem:[#allocation8 + $0x12c] sm:$0xf0]  ;;  %v3715_v23 = vld [vmem:[#allocation8 + $0x128] sm:$0xf] }
  0xdb   :  { %1787 = vmatmul.bf16.vlgmr.msrb.gmra.mxu2 %v4493_v36  ;;  %1828 = vmatpush.bf16.msra.mxu1 %v3461_v38  ;;  %v4162_v36 = vld [vmem:[#allocation8 + $0x68] sm:$0xf0]  ;;  %v4149_v38 = vld [vmem:[#allocation8 + $0x4] sm:$0xf] }
  0xdc   :  { %1842 = vmatpush.bf16.msra.mxu2 %v3557_v24  ;;  %1801 = vmatmul.bf16.vlgmr.msrb.gmra.mxu3 %v4497_v42  ;;  %v3612_v42 = vor.u32 %v4162_v36, %v3611_v57  ;;  %v3745_v57 = vld [vmem:[#allocation8 + $0x174] sm:$0xf0]  ;;  %v3751_v36 = vld [vmem:[#allocation8 + $0x170] sm:$0xf] }
  0xdd   :  { %2346 = vmatpush.bf16.msra.mxu3 %v3648_v29  ;;  %1815 = vmatmul.bf16.vlgmr.msra.gmra.mxu0 %v4495_v41  ;;  %v1511_v41 = vadd.f32 %v1510_v59, %v1497_v6  ;;  %v4152_v29 = vld [vmem:[#allocation8 + $0x1c] sm:$0xf] }
  0xde   :  { %1829 = vmatmul.bf16.vlgmr.msra.gmra.mxu1 %v4499_v46  ;;  %v3616_v46 = vor.u32 %v4161_v63, %v3613_v0  ;;  %v1564_v19 = vpop.f32.mrf.mxu2  ;;  %v1538_v22 = vpop.f32.mrf.mxu0  ;;  %v3580_v35 = vor.u32 %v4152_v29, %v3577_v31  ;;  %v3731_v63 = vld [vmem:[#allocation8 + $0x150] sm:$0xf]  ;;  %v4192_v0 = vld [vmem:[#allocation8 + $0x158] sm:$0xf0]  ;;  %v4183_v29 = vld [vmem:[#allocation8 + $0x110] sm:$0xf0] }
  0xdf   :  { %v1525_v24 = vadd.f32 %v1524_v1, %v1511_v41  ;;  %v1578_v25 = vpop.f32.mrf.mxu3  ;;  %v1552_v14 = vpop.f32.mrf.mxu1  ;;  %v1565_v37 = vadd.f32 %v1564_v19, %v1551_v27  ;;  %v3732_v1 = vor.u32 %v4192_v0, %v3731_v63  ;;  %v3727_v41 = vld [vmem:[#allocation8 + $0x140] sm:$0xf]  ;;  %v4182_v31 = vld [vmem:[#allocation8 + $0x10c] sm:$0xf]  ;;  %v4173_v0 = vld [vmem:[#allocation8 + $0xc4] sm:$0xf] }
  0xe0   :  { %2388 = vmatpush.bf16.msrb.mxu2 %v3652_v43  ;;  %v4174_v63 = vld [vmem:[#allocation8 + $0xc8] sm:$0xf0] }
  0xe1   :  { %2347 = vmatpush.bf16.msra.mxu3 %v3636_v45  ;;  %v1539_v34 = vadd.f32 %v1538_v22, %v1525_v24  ;;  %v3568_v45 = vor.u32 %v4149_v38, %v3565_v39  ;;  %v1579_v47 = vadd.f32 %v1578_v25, %v1565_v37  ;;  %v4187_v24 = vld [vmem:[#allocation8 + $0x130] sm:$0xf0]  ;;  %v3683_v38 = vld [vmem:[#allocation8 + $0xf0] sm:$0xf]  ;;  %v4180_v39 = vld [vmem:[#allocation8 + $0xf8] sm:$0xf0] }
  0xe2   :  { %v3716_v27 = vor.u32 %v4187_v24, %v3715_v23 }
  0xe3   :  { %v1553_v44 = vadd.f32 %v1552_v14, %v1539_v34  ;;  %v3703_v34 = vld [vmem:[#allocation8 + $0x110] sm:$0xf]  ;;  %v4184_v14 = vld [vmem:[#allocation8 + $0x118] sm:$0xf0] }
  0xe4   :  { %2389 = vmatpush.bf16.msrb.mxu2 %v3640_v52  ;;  %v3743_v52 = vld [vmem:[#allocation8 + $0x168] sm:$0xf]  ;;  %v3704_v37 = vor.u32 %v4184_v14, %v3703_v34 }
  0xe5   :  { %2348 = vmatpush.bf16.msra.mxu3 %v3624_v54  ;;  %v4194_v54 = vld [vmem:[#allocation8 + $0x16c] sm:$0xf]  ;;  %v3744_v56 = vor.u32 %v4195_v53, %v3743_v52  ;;  %v3671_v53 = vld [vmem:[#allocation8 + $0xd8] sm:$0xf] }
  0xe6   :  { %v1566_v40 = vpop.f32.mrf.mxu2  ;;  %v1592_v43 = vpop.f32.mrf.mxu0  ;;  %v3748_v59 = vor.u32 %v4194_v54, %v3745_v57  ;;  %v4177_v54 = vld [vmem:[#allocation8 + $0xe0] sm:$0xf0] }
  0xe7   :  { %v1567_v48 = vadd.f32 %v1566_v40, %v1553_v44  ;;  %v1580_v2 = vpop.f32.mrf.mxu3  ;;  %v1593_v50 = vadd.f32 %v1592_v43, %v1579_v47  ;;  %2360 = vmatpush.bf16.msrb.mxu0 %v3744_v56  ;;  %v4179_v40 = vld [vmem:[#allocation8 + $0xf4] sm:$0xf]  ;;  %v3684_v44 = vor.u32 %v4180_v39, %v3683_v38  ;;  %v3691_v47 = vld [vmem:[#allocation8 + $0xf8] sm:$0xf]  ;;  %v3672_v57 = vor.u32 %v4177_v54, %v3671_v53 }
  0xe8   :  { %2390 = vmatpush.bf16.msrb.mxu2 %v3628_v61  ;;  %v3752_v61 = vor.u32 %v4196_v58, %v3751_v36  ;;  %v3673_v36 = vld [vmem:[#allocation8 + $0xe4] sm:$0xf0]  ;;  %v3679_v58 = vld [vmem:[#allocation8 + $0xe0] sm:$0xf] }
  0xe9   :  { %2349 = vmatpush.bf16.msra.mxu3 %v3612_v42  ;;  %v1581_v49 = vadd.f32 %v1580_v2, %v1567_v48  ;;  %v1849_v62 = vmax.f32 %v1593_v50, 0.0  ;;  %v4181_v48 = vld [vmem:[#allocation8 + $0x100] sm:$0xf0] }
  0xea   :  { %v3692_v50 = vor.u32 %v4181_v48, %v3691_v47  ;;  %v3803_v48 = vld [vmem:[#allocation8 + $0x1e0] sm:$0xf] }
  0xeb   :  { %3560 = vmatmul.msk.bf16.vlgmr.msra.gmra.mxu2 %vm1467_vm0, %v4505_v30  ;;  %v3564_v30 = vor.u32 %v4150_v33, %v3563_v32  ;;  %2361 = vmatpush.bf16.msrb.mxu0 %v3732_v1  ;;  %v3697_v33 = vld [vmem:[#allocation8 + $0x114] sm:$0xf0] }
  0xec   :  { %2391 = vmatpush.bf16.msrb.mxu2 %v3616_v46  ;;  %v3736_v46 = vor.u32 %v4191_v3, %v3733_v4  ;;  %v3661_v4 = vld [vmem:[#allocation8 + $0xcc] sm:$0xf0] }
  0xed   :  { %2350 = vmatpush.bf16.msra.mxu3 %v3600_v9  ;;  %v3740_v9 = vor.u32 %v4193_v7, %v3739_v5  ;;  %v3667_v5 = vld [vmem:[#allocation8 + $0xc8] sm:$0xf]  ;;  %v3664_v7 = vor.u32 %v4173_v0, %v3661_v4  ;;  %v3829_v0 = vld [vmem:[#allocation8 + $0x21c] sm:$0xf0]  ;;  %v4217_v4 = vld [vmem:[#allocation8 + $0x220] sm:$0xf0] }
  0xee   :  { %v1594_v51 = vpop.f32.mrf.mxu0 }
  0xef   :  { %v1595_v55 = vadd.f32 %v1594_v51, %v1581_v49  ;;  %2362 = vmatpush.bf16.msrb.mxu0 %v3720_v13 }
  0xf0   :  { %2392 = vmatpush.bf16.msrb.mxu2 %v3604_v17  ;;  %v4190_v17 = vld [vmem:[#allocation8 + $0x148] sm:$0xf0] }
  0xf1   :  { %2351 = vmatpush.bf16.msra.mxu3 %v3588_v20  ;;  %v1852_v42 = vmax.f32 %v1595_v55, 0.0  ;;  %v3728_v19 = vor.u32 %v4190_v17, %v3727_v41  ;;  %v3707_v20 = vld [vmem:[#allocation8 + $0x120] sm:$0xf]  ;;  %v4176_v55 = vld [vmem:[#allocation8 + $0xdc] sm:$0xf] }
  0xf2   :  { %v3708_v22 = vor.u32 %v4186_v21, %v3707_v20 }
  0xf3   :  { %v4532_v6 = vpack.c.bf16 %v1852_v42, %v1849_v62  ;;  %v3659_v42 = vld [vmem:[#allocation8 + $0xc0] sm:$0xf] }
  0xf4   :  { %2393 = vmatpush.bf16.msrb.mxu2 %v3592_v26  ;;  %v3712_v26 = vor.u32 %v4185_v60, %v3709_v8  ;;  %2363 = vmatpush.bf16.msrb.mxu0 %v3708_v22  ;;  %v3660_v3 = vor.u32 %v4174_v63, %v3659_v42  ;;  %v4215_v63 = vld [vmem:[#allocation8 + $0x214] sm:$0xf] }
  0xf5   :  { %2352 = vmatpush.bf16.msra.mxu3 %v3576_v28  ;;  %v3695_v28 = vld [vmem:[#allocation8 + $0x108] sm:$0xf] }
  0xf6   :  { %v3696_v32 = vor.u32 %v4183_v29, %v3695_v28  ;;  %v3839_v28 = vld [vmem:[#allocation8 + $0x228] sm:$0xf]  ;;  %v4219_v29 = vld [vmem:[#allocation8 + $0x230] sm:$0xf0] }
  0xf7   :  { %v1606_v25 = vpop.f32.mrf.mxu1  ;;  %v3840_v34 = vor.u32 %v4219_v29, %v3839_v28  ;;  %v3793_v28 = vld [vmem:[#allocation8 + $0x1d4] sm:$0xf0]  ;;  %v3655_v29 = vld [vmem:[#allocation8 + $0xb0] sm:$0xf] }
  0xf8   :  { %2394 = vmatpush.bf16.msrb.mxu2 %v3580_v35  ;;  %v3700_v35 = vor.u32 %v4182_v31, %v3697_v33  ;;  %2364 = vmatpush.bf16.msrb.mxu0 %v3696_v32 }
  0xf9   :  { %2353 = vmatpush.bf16.msra.mxu3 %v3564_v30  ;;  %v377_v30 = vperm.slane %v4523_v16, 1  ;;  %2374 = vmatpush.bf16.msrb.mxu1 %v3840_v34  ;;  %v3799_v34 = vld [vmem:[#allocation8 + $0x1d0] sm:$0xf] }
  0xfa   :  { %v1648_v52 = vpop.f32.mrf.mxu0 }
  0xfb   :  { %v1607_v56 = vadd.f32 %v1606_v25, %v377_v30 }
  0xfc   :  { %2395 = vmatpush.bf16.msrb.mxu2 %v3568_v45  ;;  %2354 = vmatmul.bf16.vlgmr.msra.gmra.mxu3 %v4532_v6  ;;  %v3685_v45 = vld [vmem:[#allocation8 + $0xfc] sm:$0xf0] }
  0xfd   :  { %2402 = vmatpush.bf16.msrb.mxu3 %v3748_v59  ;;  %v3688_v49 = vor.u32 %v4179_v40, %v3685_v45  ;;  %2365 = vmatpush.bf16.msrb.mxu0 %v3684_v44  ;;  %v4178_v59 = vld [vmem:[#allocation8 + $0xe8] sm:$0xf0]  ;;  %v3815_v40 = vld [vmem:[#allocation8 + $0x1f8] sm:$0xf] }
  0xfe   :  { %v1620_v43 = vpop.f32.mrf.mxu2  ;;  %v3680_v62 = vor.u32 %v4178_v59, %v3679_v58  ;;  %v4220_v58 = vld [vmem:[#allocation8 + $0x238] sm:$0xf0] }
  0xff   :  { %2396 = vmatmul.bf16.vlgmr.msrb.gmra.mxu2 %v4532_v6  ;;  %v1634_v2 = vpop.f32.mrf.mxu3  ;;  %v1608_v51 = vpop.f32.mrf.mxu1  ;;  %v1621_v1 = vadd.f32 %v1620_v43, %v1607_v56  ;;  %v4213_v43 = vld [vmem:[#allocation8 + $0x200] sm:$0xf0]  ;;  %v3841_v56 = vld [vmem:[#allocation8 + $0x234] sm:$0xf0] }
 0x100   :  { %2444 = vmatpush.bf16.msra.mxu2 %v3752_v61  ;;  %v3676_v61 = vor.u32 %v4176_v55, %v3673_v36  ;;  %v1609_v11 = vadd.f32 %v1608_v51, %v377_v30  ;;  %v4216_v30 = vld [vmem:[#allocation8 + $0x218] sm:$0xf0]  ;;  %v3816_v44 = vor.u32 %v4213_v43, %v3815_v40  ;;  %v4218_v55 = vld [vmem:[#allocation8 + $0x22c] sm:$0xf]  ;;  %v3643_v40 = vld [vmem:[#allocation8 + $0x98] sm:$0xf] }
 0x101   :  { %2403 = vmatpush.bf16.msrb.mxu3 %v3736_v46  ;;  %2366 = vmatpush.bf16.msrb.mxu0 %v3672_v57  ;;  %v4175_v46 = vld [vmem:[#allocation8 + $0xd0] sm:$0xf0]  ;;  %v1635_v13 = vadd.f32 %v1634_v2, %v1621_v1  ;;  %v4210_v2 = vld [vmem:[#allocation8 + $0x1e8] sm:$0xf0]  ;;  %v3847_v57 = vld [vmem:[#allocation8 + $0x230] sm:$0xf]  ;;  %v3844_v36 = vor.u32 %v4218_v55, %v3841_v56 }
 0x102   :  { %v1650_v41 = vpop.f32.mrf.mxu0  ;;  %v3804_v51 = vor.u32 %v4210_v2, %v3803_v48  ;;  %v3848_v59 = vor.u32 %v4220_v58, %v3847_v57  ;;  %v3835_v1 = vld [vmem:[#allocation8 + $0x218] sm:$0xf]  ;;  %v3775_v55 = vld [vmem:[#allocation8 + $0x1a0] sm:$0xf]  ;;  %v4202_v56 = vld [vmem:[#allocation8 + $0x1a8] sm:$0xf0] }
 0x103   :  { %v378_v57 = vperm.slane %v4523_v16, 2  ;;  %v3776_v58 = vor.u32 %v4202_v56, %v3775_v55  ;;  %v4236_v55 = vld [vmem:[#allocation10 + $0x78] sm:$0xff]  ;;  %v4227_v56 = vld [vmem:[#allocation10 + $0x30] sm:$0xff] }
 0x104   :  { %2445 = vmatpush.bf16.msra.mxu2 %v3740_v9  ;;  %v3668_v9 = vor.u32 %v4175_v46, %v3667_v5  ;;  %v3836_v5 = vor.u32 %v4217_v4, %v3835_v1  ;;  %v3779_v46 = vld [vmem:[#allocation8 + $0x1b0] sm:$0xf]  ;;  %v3763_v4 = vld [vmem:[#allocation8 + $0x188] sm:$0xf] }
 0x105   :  { %2404 = vmatpush.bf16.msrb.mxu3 %v3724_v18  ;;  %2367 = vmatpush.bf16.msrb.mxu0 %v3660_v3  ;;  %v1649_v18 = vadd.f32 %v1648_v52, %v1635_v13  ;;  %v3832_v3 = vor.u32 %v4215_v63, %v3829_v0  ;;  %v3619_v63 = vld [vmem:[#allocation8 + $0x68] sm:$0xf] }
 0x106   :  { %v1622_v10 = vpop.f32.mrf.mxu2 }
 0x107   :  { %v1636_v12 = vpop.f32.mrf.mxu3  ;;  %v1623_v17 = vadd.f32 %v1622_v10, %v1609_v11  ;;  %v4212_v10 = vld [vmem:[#allocation8 + $0x1fc] sm:$0xf]  ;;  %v3817_v11 = vld [vmem:[#allocation8 + $0x204] sm:$0xf0] }
 0x108   :  { %2446 = vmatpush.bf16.msra.mxu2 %v3728_v19  ;;  %v3820_v13 = vor.u32 %v4212_v10, %v3817_v11  ;;  %v3607_v11 = vld [vmem:[#allocation8 + $0x50] sm:$0xf] }
 0x109   :  { %2405 = vmatpush.bf16.msrb.mxu3 %v3712_v26  ;;  %v1637_v19 = vadd.f32 %v1636_v12, %v1623_v17  ;;  %2416 = vmatpush.bf16.msra.mxu0 %v3844_v36  ;;  %v3823_v12 = vld [vmem:[#allocation8 + $0x200] sm:$0xf]  ;;  %v3767_v17 = vld [vmem:[#allocation8 + $0x198] sm:$0xf] }
 0x10b   :  { %v1651_v8 = vadd.f32 %v1650_v41, %v1637_v19 }
 0x10c   :  { %2447 = vmatpush.bf16.msra.mxu2 %v3716_v27 }
 0x10d   :  { %2406 = vmatpush.bf16.msrb.mxu3 %v3700_v35  ;;  %2417 = vmatpush.bf16.msra.mxu0 %v3832_v3  ;;  %v4163_v3 = vld [vmem:[#allocation8 + $0x70] sm:$0xf0] }
 0x110   :  { %2448 = vmatpush.bf16.msra.mxu2 %v3704_v37  ;;  %v3827_v37 = vld [vmem:[#allocation8 + $0x210] sm:$0xf] }
 0x111   :  { %2407 = vmatpush.bf16.msrb.mxu3 %v3688_v49  ;;  %v3828_v39 = vor.u32 %v4216_v30, %v3827_v37  ;;  %2418 = vmatpush.bf16.msra.mxu0 %v3820_v13 }
 0x113   :  { %2375 = vmatpush.bf16.msrb.mxu1 %v3828_v39  ;;  %v3781_v39 = vld [vmem:[#allocation8 + $0x1bc] sm:$0xf0] }
 0x114   :  { %2449 = vmatpush.bf16.msra.mxu2 %v3692_v50 }
 0x115   :  { %2408 = vmatpush.bf16.msrb.mxu3 %v3676_v61  ;;  %v3791_v61 = vld [vmem:[#allocation8 + $0x1c8] sm:$0xf] }
 0x117   :  { %v1662_v15 = vpop.f32.mrf.mxu1  ;;  %2376 = vmatpush.bf16.msrb.mxu1 %v3816_v44  ;;  %v4169_v44 = vld [vmem:[#allocation8 + $0xa0] sm:$0xf0] }
 0x118   :  { %2450 = vmatpush.bf16.msra.mxu2 %v3680_v62  ;;  %v1663_v20 = vadd.f32 %v1662_v15, %v1649_v18  ;;  %v4207_v62 = vld [vmem:[#allocation8 + $0x1d0] sm:$0xf0]  ;;  %v4214_v15 = vld [vmem:[#allocation8 + $0x208] sm:$0xf0]  ;;  %v4201_v18 = vld [vmem:[#allocation8 + $0x1a0] sm:$0xf0]  ;;  %v3644_v48 = vor.u32 %v4169_v44, %v3643_v40 }
 0x119   :  { %2409 = vmatpush.bf16.msrb.mxu3 %v3664_v7  ;;  %v3792_v42 = vor.u32 %v4207_v62, %v3791_v61  ;;  %v4204_v7 = vld [vmem:[#allocation8 + $0x1b8] sm:$0xf0]  ;;  %v3824_v41 = vor.u32 %v4214_v15, %v3823_v12  ;;  %v3768_v19 = vor.u32 %v4201_v18, %v3767_v17  ;;  %v4197_v62 = vld [vmem:[#allocation8 + $0x184] sm:$0xf]  ;;  %v3595_v17 = vld [vmem:[#allocation8 + $0x38] sm:$0xf] }
 0x11a   :  { %v1704_v23 = vpop.f32.mrf.mxu0  ;;  %v4160_v12 = vld [vmem:[#allocation8 + $0x58] sm:$0xf0]  ;;  %v4157_v18 = vld [vmem:[#allocation8 + $0x40] sm:$0xf0] }
 0x11b   :  { %2377 = vmatpush.bf16.msrb.mxu1 %v3804_v51  ;;  %v3769_v51 = vld [vmem:[#allocation8 + $0x1a4] sm:$0xf0]  ;;  %v3608_v15 = vor.u32 %v4160_v12, %v3607_v11  ;;  %v4240_v12 = vld [vmem:[#allocation10 + $0x98] sm:$0xff] }
 0x11c   :  { %2451 = vmatpush.bf16.msra.mxu2 %v3668_v9  ;;  %v3780_v9 = vor.u32 %v4204_v7, %v3779_v46  ;;  %v3620_v7 = vor.u32 %v4163_v3, %v3619_v63  ;;  %v4231_v63 = vld [vmem:[#allocation10 + $0x50] sm:$0xff]  ;;  %v4230_v3 = vld [vmem:[#allocation10 + $0x48] sm:$0xff] }
 0x11d   :  { %2458 = vmatpush.bf16.msra.mxu3 %v3848_v59 }
 0x11e   :  { %v1676_v21 = vpop.f32.mrf.mxu2 }
 0x11f   :  { %v1664_v60 = vpop.f32.mrf.mxu1  ;;  %v1690_v22 = vpop.f32.mrf.mxu3  ;;  %v1677_v24 = vadd.f32 %v1676_v21, %v1663_v20  ;;  %2378 = vmatpush.bf16.msrb.mxu1 %v3792_v42  ;;  %v4209_v20 = vld [vmem:[#allocation8 + $0x1e4] sm:$0xf]  ;;  %v3805_v21 = vld [vmem:[#allocation8 + $0x1ec] sm:$0xf0] }
 0x120   :  { %v1665_v25 = vadd.f32 %v1664_v60, %v1651_v8  ;;  %v3811_v60 = vld [vmem:[#allocation8 + $0x1e8] sm:$0xf]  ;;  %v4211_v8 = vld [vmem:[#allocation8 + $0x1f0] sm:$0xf0]  ;;  %v3757_v42 = vld [vmem:[#allocation8 + $0x18c] sm:$0xf0] }
 0x121   :  { %v1691_v26 = vadd.f32 %v1690_v22, %v1677_v24  ;;  %2459 = vmatpush.bf16.msra.mxu3 %v3836_v5  ;;  %v3808_v22 = vor.u32 %v4209_v20, %v3805_v21  ;;  %v3755_v24 = vld [vmem:[#allocation8 + $0x180] sm:$0xf]  ;;  %v3760_v1 = vor.u32 %v4197_v62, %v3757_v42  ;;  %v4199_v5 = vld [vmem:[#allocation8 + $0x190] sm:$0xf0]  ;;  %v3596_v20 = vor.u32 %v4157_v18, %v3595_v17  ;;  %v4224_v62 = vld [vmem:[#allocation10 + $0x18] sm:$0xff] }
 0x122   :  { %v1706_v38 = vpop.f32.mrf.mxu0  ;;  %v4232_v42 = vld [vmem:[#allocation10 + $0x58] sm:$0xff]  ;;  %v4238_v18 = vld [vmem:[#allocation10 + $0x88] sm:$0xff] }
 0x123   :  { %v1705_v14 = vadd.f32 %v1704_v23, %v1691_v26  ;;  %2379 = vmatpush.bf16.msrb.mxu1 %v3780_v9  ;;  %v3812_v23 = vor.u32 %v4211_v8, %v3811_v60  ;;  %2419 = vmatpush.bf16.msra.mxu0 %v3808_v22  ;;  %v3764_v9 = vor.u32 %v4199_v5, %v3763_v4  ;;  %v4243_v4 = vld [vmem:[#allocation10 + $0xb0] sm:$0xff] }
 0x125   :  { %2460 = vmatpush.bf16.msra.mxu3 %v3824_v41 }
 0x126   :  { %v1678_v27 = vpop.f32.mrf.mxu2 }
 0x127   :  { %v1679_v31 = vadd.f32 %v1678_v27, %v1665_v25  ;;  %v1692_v32 = vpop.f32.mrf.mxu3  ;;  %v1718_v33 = vpop.f32.mrf.mxu1  ;;  %2380 = vmatpush.bf16.msrb.mxu1 %v3768_v19  ;;  %v4198_v25 = vld [vmem:[#allocation8 + $0x188] sm:$0xf0] }
 0x128   :  { %v1719_v45 = vadd.f32 %v1718_v33, %v1705_v14  ;;  %v3756_v26 = vor.u32 %v4198_v25, %v3755_v24  ;;  %v4206_v27 = vld [vmem:[#allocation8 + $0x1cc] sm:$0xf]  ;;  %v4172_v33 = vld [vmem:[#allocation8 + $0xb8] sm:$0xf0]  ;;  %v3583_v24 = vld [vmem:[#allocation8 + $0x20] sm:$0xf] }
 0x129   :  { %v1693_v35 = vadd.f32 %v1692_v32, %v1679_v31  ;;  %2461 = vmatpush.bf16.msra.mxu3 %v3812_v23  ;;  %v3796_v32 = vor.u32 %v4206_v27, %v3793_v28  ;;  %v4208_v14 = vld [vmem:[#allocation8 + $0x1d8] sm:$0xf0]  ;;  %v4154_v25 = vld [vmem:[#allocation8 + $0x28] sm:$0xf0] }
 0x12a   :  { %v1850_v52 = vmax.f32 %v1719_v45, 0.0  ;;  %v3800_v37 = vor.u32 %v4208_v14, %v3799_v34  ;;  %v3787_v45 = vld [vmem:[#allocation8 + $0x1b8] sm:$0xf]  ;;  %v3584_v27 = vor.u32 %v4154_v25, %v3583_v24 }
 0x12b   :  { %v1707_v47 = vadd.f32 %v1706_v38, %v1693_v35  ;;  %2381 = vmatpush.bf16.msrb.mxu1 %v3756_v26  ;;  %v3656_v35 = vor.u32 %v4172_v33, %v3655_v29  ;;  %2420 = vmatpush.bf16.msra.mxu0 %v3796_v32  ;;  %v4203_v38 = vld [vmem:[#allocation8 + $0x1b4] sm:$0xf]  ;;  %v3571_v29 = vld [vmem:[#allocation8 + $0x8] sm:$0xf] }
 0x12c   :  { %v3784_v43 = vor.u32 %v4203_v38, %v3781_v39 }
 0x12d   :  { %2462 = vmatpush.bf16.msra.mxu3 %v3800_v37 }
 0x12f   :  { %v1720_v49 = vpop.f32.mrf.mxu1  ;;  %2430 = vmatpush.bf16.msra.mxu1 %v3656_v35  ;;  %2421 = vmatpush.bf16.msra.mxu0 %v3784_v43 }
 0x130   :  { %v1721_v50 = vadd.f32 %v1720_v49, %v1707_v47  ;;  %v4205_v47 = vld [vmem:[#allocation8 + $0x1c0] sm:$0xf0] }
 0x131   :  { %v3788_v2 = vor.u32 %v4205_v47, %v3787_v45 }
 0x132   :  { %v1853_v53 = vmax.f32 %v1721_v50, 0.0  ;;  %v4200_v50 = vld [vmem:[#allocation8 + $0x19c] sm:$0xf] }
 0x133   :  { %2431 = vmatpush.bf16.msra.mxu1 %v3644_v48  ;;  %2463 = vmatpush.bf16.msra.mxu3 %v3788_v2 }
 0x134   :  { %v1856_v54 = vpack.c.bf16 %v1853_v53, %v1850_v52  ;;  %v3631_v52 = vld [vmem:[#allocation8 + $0x80] sm:$0xf]  ;;  %v3772_v53 = vor.u32 %v4200_v50, %v3769_v51 }
 0x136   :  { %2368 = vmatmul.bf16.vlgmr.msrb.gmra.mxu0 %v1856_v54  ;;  %2410 = vmatmul.bf16.vlgmr.msrb.gmra.mxu3 %v1856_v54 }
 0x137   :  { %2452 = vmatmul.bf16.vlgmr.msra.gmra.mxu2 %v1856_v54  ;;  %v4166_v54 = vld [vmem:[#allocation8 + $0x88] sm:$0xf0]  ;;  %2422 = vmatpush.bf16.msra.mxu0 %v3772_v53 }
 0x138   :  { %v3632_v36 = vor.u32 %v4166_v54, %v3631_v52  ;;  %2464 = vmatpush.bf16.msra.mxu3 %v3776_v58  ;;  %v4228_v54 = vld [vmem:[#allocation10 + $0x38] sm:$0xff]  ;;  %v4234_v58 = vld [vmem:[#allocation10 + $0x68] sm:$0xff] }
 0x13a   :  { %v1760_v49 = vpop.f32.mrf.mxu0  ;;  %2432 = vmatpush.bf16.msra.mxu1 %v3632_v36  ;;  %v4226_v36 = vld [vmem:[#allocation10 + $0x28] sm:$0xff] }
 0x13b   :  { %v1774_v59 = vpop.f32.mrf.mxu1  ;;  %2423 = vmatpush.bf16.msra.mxu0 %v3760_v1  ;;  %v4222_v1 = vld [vmem:[#allocation10 + $0x8] sm:$0xff] }
 0x13c   :  { %2465 = vmatpush.bf16.msra.mxu3 %v3764_v9  ;;  %v4242_v9 = vld [vmem:[#allocation10 + $0xa8] sm:$0xff] }
 0x13e   :  { %v1732_v31 = vpop.f32.mrf.mxu2  ;;  %2433 = vmatpush.bf16.msra.mxu1 %v3620_v7  ;;  %v4229_v7 = vld [vmem:[#allocation10 + $0x40] sm:$0xff] }
 0x13f   :  { %v1746_v30 = vpop.f32.mrf.mxu3  ;;  %v1733_v46 = vadd.f32 %v1732_v31, %v378_v57  ;;  %v4151_v31 = vld [vmem:[#allocation8 + $0x10] sm:$0xf0]  ;;  %2677 = vmatpush.bf16.msrb.mxu0 %v4228_v54 }
 0x140   :  { %v3572_v34 = vor.u32 %v4151_v31, %v3571_v29 }
 0x141   :  { %v1747_v13 = vadd.f32 %v1746_v30, %v1733_v46  ;;  %v4221_v46 = vld [vmem:[#allocation10] sm:$0xff] }
 0x142   :  { %v1762_v10 = vpop.f32.mrf.mxu0  ;;  %2434 = vmatpush.bf16.msra.mxu1 %v3608_v15 }
 0x143   :  { %v1776_v21 = vpop.f32.mrf.mxu1  ;;  %v1761_v22 = vadd.f32 %v1760_v49, %v1747_v13  ;;  %2678 = vmatpush.bf16.msrb.mxu0 %v4227_v56  ;;  %v4239_v13 = vld [vmem:[#allocation10 + $0x90] sm:$0xff] }
 0x145   :  { %v1775_v26 = vadd.f32 %v1774_v59, %v1761_v22  ;;  %v4225_v59 = vld [vmem:[#allocation10 + $0x20] sm:$0xff] }
 0x146   :  { %v1734_v61 = vpop.f32.mrf.mxu2  ;;  %2435 = vmatpush.bf16.msra.mxu1 %v3596_v20 }
 0x147   :  { %v1748_v0 = vpop.f32.mrf.mxu3  ;;  %v1735_v16 = vadd.f32 %v1734_v61, %v378_v57  ;;  %v4235_v57 = vld [vmem:[#allocation10 + $0x70] sm:$0xff]  ;;  %2679 = vmatpush.bf16.msrb.mxu0 %v4226_v36  ;;  %v4233_v61 = vld [vmem:[#allocation10 + $0x60] sm:$0xff] }
 0x149   :  { %v1749_v19 = vadd.f32 %v1748_v0, %v1735_v16  ;;  %v4244_v0 = vld [vmem:[#allocation10 + $0xb8] sm:$0xff] }
 0x14a   :  { %2436 = vmatpush.bf16.msra.mxu1 %v3584_v27  ;;  %2705 = vmatpush.bf16.msrb.mxu2 %v4244_v0 }
 0x14b   :  { %v1763_v8 = vadd.f32 %v1762_v10, %v1749_v19  ;;  %2680 = vmatpush.bf16.msrb.mxu0 %v4225_v59  ;;  %v4241_v10 = vld [vmem:[#allocation10 + $0xa0] sm:$0xff]  ;;  %v1954_v19 = vld [vmem:[%s4552_s4] sm:$0x7] }
 0x14c   :  { %v1956_v20 = vperm.slane %v1954_v19, 0 }
 0x14d   :  { %v1777_v32 = vadd.f32 %v1776_v21, %v1763_v8  ;;  %v1957_v21 = vperm.slane %v1954_v19, 1 }
 0x14e   :  { %2437 = vmatpush.bf16.msra.mxu1 %v3572_v34  ;;  %2706 = vmatpush.bf16.msrb.mxu2 %v4243_v4 }
 0x14f   :  { %2681 = vmatpush.bf16.msrb.mxu0 %v4224_v62 }
 0x152   :  { %2707 = vmatpush.bf16.msrb.mxu2 %v4242_v9 }
 0x156   :  { %2708 = vmatpush.bf16.msrb.mxu2 %v4241_v10 }
 0x15a   :  { %v1816_v23 = vpop.f32.mrf.mxu0  ;;  %2709 = vmatpush.bf16.msrb.mxu2 %v4240_v12 }
 0x15b   :  { %v1830_v14 = vpop.f32.mrf.mxu1 }
 0x15e   :  { %v1788_v41 = vpop.f32.mrf.mxu2  ;;  %2710 = vmatpush.bf16.msrb.mxu2 %v4239_v13 }
 0x15f   :  { %v1802_v60 = vpop.f32.mrf.mxu3  ;;  %v1789_v33 = vadd.f32 %v1788_v41, %v1775_v26 }
 0x161   :  { %v1803_v30 = vadd.f32 %v1802_v60, %v1789_v33  ;;  %v4237_v60 = vld [vmem:[#allocation10 + $0x80] sm:$0xff] }
 0x162   :  { %v1818_v39 = vpop.f32.mrf.mxu0  ;;  %2711 = vmatpush.bf16.msrb.mxu2 %v4238_v18 }
 0x163   :  { %v1817_v43 = vadd.f32 %v1816_v23, %v1803_v30  ;;  %v1832_v45 = vpop.f32.mrf.mxu1 }
 0x165   :  { %v1831_v47 = vadd.f32 %v1830_v14, %v1817_v43 }
 0x166   :  { %v1790_v28 = vpop.f32.mrf.mxu2  ;;  %2712 = vmatpush.bf16.msrb.mxu2 %v4237_v60 }
 0x167   :  { %v1791_v35 = vadd.f32 %v1790_v28, %v1777_v32  ;;  %v1804_v37 = vpop.f32.mrf.mxu3 }
 0x169   :  { %v1805_v38 = vadd.f32 %v1804_v37, %v1791_v35 }
 0x16b   :  { %v1819_v44 = vadd.f32 %v1818_v39, %v1805_v38 }
 0x16d   :  { %v1833_v48 = vadd.f32 %v1832_v45, %v1819_v44 }
 0x16e   :  { %v1844_v40 = vpop.f32.mrf.mxu2 }
 0x16f   :  { %v1845_v2 = vadd.f32 %v1844_v40, %v1831_v47 }
 0x171   :  { %v1851_v51 = vmax.f32 %v1845_v2, 0.0 }
 0x176   :  { %v1846_v49 = vpop.f32.mrf.mxu2 }
 0x177   :  { %v1847_v50 = vadd.f32 %v1846_v49, %v1833_v48  ;;  %v1958_v48 = vperm.slane %v1954_v19, 2 }
 0x179   :  { %v1854_v52 = vmax.f32 %v1847_v50, 0.0 }
 0x17b   :  { %v1857_v53 = vpack.c.bf16 %v1854_v52, %v1851_v51 }
 0x17d   :  { %2382 = vmatmul.bf16.vlgmr.msrb.gmra.mxu1 %v1857_v53  ;;  %2424 = vmatmul.bf16.vlgmr.msra.gmra.mxu0 %v1857_v53 }
 0x17e   :  { %2466 = vmatmul.bf16.vlgmr.msra.gmra.mxu3 %v1857_v53  ;;  %2691 = vmatpush.bf16.msrb.mxu1 %v4236_v55 }
 0x17f   :  { %v2355_v5 = vpop.f32.mrf.mxu3 }
 0x180   :  { %v2356_v24 = vadd.f32 %v2355_v5, %v1956_v20 }
 0x182   :  { %2692 = vmatpush.bf16.msrb.mxu1 %v4235_v57  ;;  %v2397_v15 = vpop.f32.mrf.mxu2 }
 0x183   :  { %v2398_v25 = vadd.f32 %v2397_v15, %v1957_v21 }
 0x186   :  { %2693 = vmatpush.bf16.msrb.mxu1 %v4234_v58 }
 0x187   :  { %v2357_v11 = vpop.f32.mrf.mxu3 }
 0x188   :  { %v2358_v27 = vadd.f32 %v2357_v11, %v1956_v20 }
 0x18a   :  { %2694 = vmatpush.bf16.msrb.mxu1 %v4233_v61  ;;  %v2399_v23 = vpop.f32.mrf.mxu2 }
 0x18b   :  { %v2400_v28 = vadd.f32 %v2399_v23, %v1957_v21 }
 0x18d   :  { %2438 = vmatmul.bf16.vlgmr.msra.gmra.mxu1 %v4532_v6  ;;  %v4223_v6 = vld [vmem:[#allocation10 + $0x10] sm:$0xff] }
 0x18e   :  { %2695 = vmatpush.bf16.msrb.mxu1 %v4232_v42  ;;  %2682 = vmatpush.bf16.msrb.mxu0 %v4223_v6  ;;  %v4259_v6 = vld [vmem:[%s4554_s6] ss:$0 sm:$0xff]  ;;  %s4424_s6 = smov 128  }
 0x192   :  { %2696 = vmatpush.bf16.msrb.mxu1 %v4231_v63  ;;  %2683 = vmatpush.bf16.msrb.mxu0 %v4222_v1 }
 0x196   :  { %2697 = vmatpush.bf16.msrb.mxu1 %v4230_v3  ;;  %2684 = vmatpush.bf16.msrb.mxu0 %v4221_v46 }
 0x19a   :  { %2698 = vmatpush.bf16.msrb.mxu1 %v4229_v7 }
 0x1b3   :  { %v2369_v16 = vpop.f32.mrf.mxu0 }
 0x1b4   :  { %v2370_v29 = vadd.f32 %v2369_v16, %v2356_v24 }
 0x1b9   :  { %v2411_v17 = vpop.f32.mrf.mxu3 }
 0x1ba   :  { %v2412_v31 = vadd.f32 %v2411_v17, %v2398_v25  ;;  %v2453_v2 = vpop.f32.mrf.mxu2 }
 0x1bb   :  { %v2371_v41 = vpop.f32.mrf.mxu0 }
 0x1bc   :  { %v2372_v32 = vadd.f32 %v2371_v41, %v2358_v27 }
 0x1c1   :  { %v2413_v26 = vpop.f32.mrf.mxu3 }
 0x1c2   :  { %v2414_v33 = vadd.f32 %v2413_v26, %v2400_v28  ;;  %v2455_v55 = vpop.f32.mrf.mxu2 }
 0x1fa   :  { %v2383_v22 = vpop.f32.mrf.mxu1  ;;  %v2425_v8 = vpop.f32.mrf.mxu0 }
 0x1fb   :  { %v2384_v34 = vadd.f32 %v2383_v22, %v2370_v29  ;;  %v2426_v14 = vadd.f32 %v2425_v8, %v2412_v31 }
 0x1fd   :  { %v2472_v39 = vmax.f32 %v2384_v34, 0.0  ;;  %v2473_v40 = vmax.f32 %v2426_v14, 0.0 }
 0x201   :  { %v2467_v50 = vpop.f32.mrf.mxu3 }
 0x202   :  { %v2385_v35 = vpop.f32.mrf.mxu1  ;;  %v2427_v37 = vpop.f32.mrf.mxu0 }
 0x203   :  { %v2386_v30 = vadd.f32 %v2385_v35, %v2372_v32  ;;  %v2428_v38 = vadd.f32 %v2427_v37, %v2414_v33 }
 0x205   :  { %v2475_v43 = vmax.f32 %v2386_v30, 0.0  ;;  %v2476_v44 = vmax.f32 %v2428_v38, 0.0 }
 0x207   :  { %v2478_v45 = vpack.c.bf16 %v2475_v43, %v2472_v39  ;;  %v2479_v47 = vpack.c.bf16 %v2476_v44, %v2473_v40 }
 0x209   :  { %2685 = vmatmul.bf16.vlgmr.msrb.gmra.mxu0 %v2478_v45  ;;  %2699 = vmatmul.bf16.vlgmr.msrb.gmra.mxu1 %v2479_v47  ;;  %v2469_v36 = vpop.f32.mrf.mxu3 }
 0x20a   :  { %v2439_v49 = vpop.f32.mrf.mxu1 }
 0x20b   :  { %v2440_v51 = vadd.f32 %v2439_v49, %v1958_v48 }
 0x20d   :  { %v2454_v52 = vadd.f32 %v2453_v2, %v2440_v51 }
 0x20f   :  { %v2468_v56 = vadd.f32 %v2467_v50, %v2454_v52 }
 0x211   :  { %v2474_v59 = vmax.f32 %v2468_v56, 0.0 }
 0x212   :  { %v2441_v53 = vpop.f32.mrf.mxu1 }
 0x213   :  { %v2442_v54 = vadd.f32 %v2441_v53, %v1958_v48 }
 0x215   :  { %v2456_v57 = vadd.f32 %v2455_v55, %v2442_v54 }
 0x217   :  { %v2470_v58 = vadd.f32 %v2469_v36, %v2456_v57 }
 0x219   :  { %v2477_v61 = vmax.f32 %v2470_v58, 0.0 }
 0x21b   :  { %v2480_v62 = vpack.c.bf16 %v2477_v61, %v2474_v59 }
 0x21d   :  { %2713 = vmatmul.bf16.vlgmr.msrb.gmra.mxu2 %v2480_v62 }
 0x286   :  { %v2686_v42 = vpop.f32.mrf.mxu0  ;;  %v2700_v0 = vpop.f32.mrf.mxu1 }
 0x287   :  { %v2687_v63 = vadd.f32 %v4259_v6, %v2686_v42 }
 0x289   :  { %v2701_v1 = vadd.f32 %v2700_v0, %v2687_v63 }
 0x28e   :  { %v2688_v3 = vpop.f32.mrf.mxu0  ;;  %v2702_v7 = vpop.f32.mrf.mxu1 }
 0x28f   :  { %v2689_v46 = vadd.f32 %v4259_v6, %v2688_v3 }
 0x291   :  { %v2703_v9 = vadd.f32 %v2702_v7, %v2689_v46 }
 0x2a0   :  { %v2714_v4 = vpop.f32.mrf.mxu2 }
 0x2a1   :  { %v2715_v5 = vadd.f32 %v2714_v4, %v2701_v1 }
 0x2a3   :  { %2719 = vst [vmem:[#allocation11] sm:$0xff] %v2715_v5 }
 0x2a8   :  { %v2716_v16 = vpop.f32.mrf.mxu2 }
 0x2a9   :  { %v2717_v10 = vadd.f32 %v2716_v16, %v2703_v9 }
 0x2ab   :  { %2720 = vst [vmem:[#allocation11 + $0x8] sm:$0xff] %v2717_v10 }
 0x2ac   :  { %2733 = dma.vmem_to_hbm [thread:$0]  %s2726_s8, 256, %s2728_s11, [#allocation4], %s4424_s6, %s4424_s6, %s4425_s12  }
 0x2ad   :  { %4410 = dma.done.wait [#allocation4], 256  }
 0x2ae   :  { %4411 = vsyncadd [#allocation4], 4294967040 }
 0x2af   :  { %2738 = vsyncpa [#allocation3], 1 }
 0x2b0   :  { %2739 = vsyncpa [#allocation6], 1 }
 0x2b1   :  { %2740 = vsyncpa [#allocation9], 1 }
 0x2b2   :  { %2741 = vsyncpa [#allocation4], 1 }

</bundles_post_ra>
